<compile_context>
chip_gen: v5e
topology: v5e:2x2
jax: 0.10.0
libtpu: 0.0.40
codegen_flags: <defaults>
</compile_context>

<pallas_src>
import functools

import jax
import jax.numpy as jnp
from jax.experimental import pallas as pl
from jax.experimental.pallas import tpu as pltpu


def video_model_kernel(
    x_ref, pos_ref,
    wq_ref, bq_ref, wk_ref, bk_ref, wv_ref, bv_ref,
    wo_ref, bo_ref, g_ref, beta_ref,
    wc_ref, bc_ref,
    o_ref,
    *, n_heads, head_pad,
):
    B, S, D = x_ref.shape
    n_classes = o_ref.shape[-1]
    HP = head_pad
    f32 = jnp.float32

    # positional encoding add (fastai PositionalEncoding; precomputed constant buffer)
    h0 = x_ref[...].astype(f32) + pos_ref[...][None, :, :]           # (B, S, D)
    h2 = h0.reshape(B * S, D)                                        # leading-dim merge

    # ---- Q/K/V projections onto head-padded lanes ----------------------------------
    # head h occupies lanes [h*128, h*128 + d_head); padding columns/biases are zero,
    # so all later per-head slices are 128-lane-tile aligned (free views).
    q2 = jnp.dot(h2, wq_ref[...], preferred_element_type=f32) + bq_ref[...]
    k2 = jnp.dot(h2, wk_ref[...], preferred_element_type=f32) + bk_ref[...]
    v2 = jnp.dot(h2, wv_ref[...], preferred_element_type=f32) + bv_ref[...]

    q3 = q2.reshape(B, S, n_heads * HP)                              # leading-dim split
    k3 = k2.reshape(B, S, n_heads * HP)
    v3 = v2.reshape(B, S, n_heads * HP)

    # TODO(synk): attention mask not implemented (VideoModel.forward uses mask=None).
    out2 = jnp.zeros((B * S, D), f32)
    for h in range(n_heads):                         # static unroll; n_heads is small
        sl = slice(h * HP, (h + 1) * HP)             # 128-aligned lane-tile slice
        s = jnp.einsum("bqd,bkd->bqk", q3[..., sl], k3[..., sl],
                       preferred_element_type=f32)                   # (B, S, S)
        s = s - jnp.max(s, axis=-1, keepdims=True)
        p = jnp.exp(s)
        p = p / jnp.sum(p, axis=-1, keepdims=True)   # exact softmax denominator
        attn_h = jnp.einsum("bqk,bkd->bqd", p, v3[..., sl],
                            preferred_element_type=f32)              # (B, S, HP)
        # accumulate output projection per head (Wo passed as zero-padded blocks)
        out2 = out2 + jnp.dot(attn_h.reshape(B * S, HP), wo_ref[h],
                              preferred_element_type=f32)            # (B*S, D)

    # residual + output-projection bias + LayerNorm (fastai MHA: ln(x + out(attn)))
    y2 = h2 + out2 + bo_ref[...]
    mu = jnp.mean(y2, axis=-1, keepdims=True)
    var = jnp.mean((y2 - mu) ** 2, axis=-1, keepdims=True)
    y2 = (y2 - mu) * jax.lax.rsqrt(var + 1e-5) * g_ref[...] + beta_ref[...]

    # ---- classifier: logits[b, c] = sum_{s,d} y[b,s,d] * Wc[c,s,d] + bc[c] ----------
    # Collapsed to a VPU broadcast-mul + reduce per class (no tiny MXU passes).
    y3 = y2.reshape(B, S, D)                                         # leading-dim split
    cols = []
    for c in range(n_classes):                        # static unroll; 2 classes
        prod = y3 * wc_ref[c][None, :, :]                             # (B, S, D)
        cols.append(jnp.sum(jnp.sum(prod, axis=-1), axis=-1, keepdims=True))  # (B, 1)
    logits = jnp.concatenate(cols, axis=-1) + bc_ref[...]             # (B, C)
    o_ref[...] = logits.astype(o_ref.dtype)


def video_model(x, pos_enc, params, *, n_heads, d_head, scale=True):
    """x: (B, S, D); params = (wqkv, bqkv, wo, bo, gamma, beta, wc(S,D,C), bc)."""
    wqkv, bqkv, wo, bo, g, be, wc, bc = params
    B, S, D = x.shape
    hd = n_heads * d_head
    n_classes = bc.shape[-1]
    HP = 128  # each head gets its own 128-lane tile inside the kernel

    # ---- wrapper-side layout prep (plain XLA ops, outside the kernel) --------------
    def split_pad(start):
        wi = wqkv[:, start:start + hd].reshape(D, n_heads, d_head)
        bi = bqkv[:, start:start + hd].reshape(1, n_heads, d_head)
        wp = jnp.zeros((D, n_heads, HP), wqkv.dtype).at[:, :, :d_head].set(wi)
        bp = jnp.zeros((1, n_heads, HP), bqkv.dtype).at[:, :, :d_head].set(bi)
        return wp.reshape(D, n_heads * HP), bp.reshape(1, n_heads * HP)

    wq_p, bq_p = split_pad(0)
    wk_p, bk_p = split_pad(hd)
    wv_p, bv_p = split_pad(2 * hd)
    if scale:                                   # fold 1/sqrt(d_head) into Q weights
        inv = 1.0 / (float(d_head) ** 0.5)
        wq_p = wq_p * inv
        bq_p = bq_p * inv
    wo_p = jnp.zeros((n_heads, HP, D), wo.dtype).at[:, :d_head, :].set(
        wo.reshape(n_heads, d_head, D))
    wc_k = jnp.transpose(wc, (2, 0, 1))         # (S, D, C) -> (C, S, D)

    inputs = (x, pos_enc, wq_p, bq_p, wk_p, bk_p, wv_p, bv_p,
              wo_p, bo, g, be, wc_k, bc)
    kern = functools.partial(video_model_kernel, n_heads=n_heads, head_pad=HP)

    # Un-gridded invocation: every operand (and the output) lives wholly in VMEM,
    # so there is no software-pipeline / double-buffered DMA setup.
    return pl.pallas_call(
        kern,
        out_shape=jax.ShapeDtypeStruct((B, n_classes), x.dtype),
        in_specs=[pl.BlockSpec(memory_space=pltpu.MemorySpace.VMEM) for _ in inputs],
        out_specs=pl.BlockSpec(memory_space=pltpu.MemorySpace.VMEM),
    )(*inputs)


def positional_encoding(seq_len, d_model, dtype=jnp.float32):
    """fastai.text PositionalEncoding applied to pos = arange(seq_len)."""
    pos = jnp.arange(seq_len, dtype=dtype)
    freq = 1.0 / (10000.0 ** (jnp.arange(0.0, d_model, 2.0, dtype=dtype) / d_model))
    inp = pos[:, None] * freq[None, :]
    return jnp.concatenate([jnp.sin(inp), jnp.cos(inp)], axis=-1)      # (S, D)


def _reference(x, pos_enc, params, *, n_heads, d_head, scale=True):
    wqkv, bqkv, wo, bo, g, be, wc3, bc = params
    B, S, D = x.shape
    hd = n_heads * d_head
    xp = x + pos_enc[None]
    qkv = xp @ wqkv + bqkv
    q, k, v = qkv[..., :hd], qkv[..., hd:2 * hd], qkv[..., 2 * hd:]
    q = q.reshape(B, S, n_heads, d_head).transpose(0, 2, 1, 3)
    k = k.reshape(B, S, n_heads, d_head).transpose(0, 2, 1, 3)
    v = v.reshape(B, S, n_heads, d_head).transpose(0, 2, 1, 3)
    s = jnp.einsum("bhqd,bhkd->bhqk", q, k)
    if scale:
        s = s / (d_head ** 0.5)
    p = jax.nn.softmax(s, axis=-1)
    av = jnp.einsum("bhqk,bhkd->bhqd", p, v).transpose(0, 2, 1, 3).reshape(B, S, hd)
    y = av @ wo + bo + xp
    y = (y - y.mean(-1, keepdims=True)) / jnp.sqrt(y.var(-1, keepdims=True) + 1e-5) * g + be
    flat = y.reshape(B, S * D)
    return flat @ wc3.reshape(S * D, -1) + bc


if __name__ == "__main__":
    # Small config consistent with the module: n_heads=5 (module default),
    # frame_embedding_size=40 -> d_head=8, n_frames=8, batch=2, 2 output classes.
    B, S, D = 2, 8, 40
    n_heads = 5
    d_head = D // n_heads
    hd = n_heads * d_head
    n_classes = 2

    key = jax.random.PRNGKey(0)
    ks = jax.random.split(key, 7)

    def u(k, shape, fan_in):
        bound = 1.0 / (fan_in ** 0.5)
        return jax.random.uniform(k, shape, jnp.float32, -bound, bound)

    # Linear weights stored as (in_features, out_features) so the kernel computes x @ W.
    wqkv = u(ks[0], (D, 3 * hd), D)
    bqkv = u(ks[1], (1, 3 * hd), D)
    wo   = u(ks[2], (hd, D), hd)
    bo   = u(ks[3], (1, D), hd)
    g    = jnp.ones((1, D), jnp.float32)          # LayerNorm gamma
    be   = jnp.zeros((1, D), jnp.float32)         # LayerNorm beta
    wc   = u(ks[4], (S, D, n_classes), S * D)     # classifier weight, (S*D,2)->(S,D,2)
    bc   = u(ks[5], (1, n_classes), S * D)
    params = (wqkv, bqkv, wo, bo, g, be, wc, bc)

    pos_enc = positional_encoding(S, D)
    x = jax.random.normal(ks[6], (B, S, D), jnp.float32)

    out = video_model(x, pos_enc, params, n_heads=n_heads, d_head=d_head, scale=True)
    out = jax.block_until_ready(out)

    ref = _reference(x, pos_enc, params, n_heads=n_heads, d_head=d_head, scale=True)
    assert out.shape == (B, n_classes)
    err = float(jnp.max(jnp.abs(out - ref)))
    assert jnp.allclose(out, ref, atol=1e-3, rtol=1e-3), err
    print("KERNEL_OK")
</pallas_src>

<mosaic_0001>
module attributes {stable_mosaic.version = 11 : i64} {
  func.func @video_model_kernel(%arg0: memref<2x8x40xf32, #tpu.memory_space<vmem>>, %arg1: memref<8x40xf32, #tpu.memory_space<vmem>>, %arg2: memref<40x640xf32, #tpu.memory_space<vmem>>, %arg3: memref<1x640xf32, #tpu.memory_space<vmem>>, %arg4: memref<40x640xf32, #tpu.memory_space<vmem>>, %arg5: memref<1x640xf32, #tpu.memory_space<vmem>>, %arg6: memref<40x640xf32, #tpu.memory_space<vmem>>, %arg7: memref<1x640xf32, #tpu.memory_space<vmem>>, %arg8: memref<5x128x40xf32, #tpu.memory_space<vmem>>, %arg9: memref<1x40xf32, #tpu.memory_space<vmem>>, %arg10: memref<1x40xf32, #tpu.memory_space<vmem>>, %arg11: memref<1x40xf32, #tpu.memory_space<vmem>>, %arg12: memref<2x8x40xf32, #tpu.memory_space<vmem>>, %arg13: memref<1x2xf32, #tpu.memory_space<vmem>>, %arg14: memref<2x2xf32, #tpu.memory_space<vmem>>) attributes {dimension_semantics = [], scalar_prefetch = 0 : i64, scratch_operands = 0 : i64, tpu.core_type = #tpu.core_type<tc>} {
    %c0 = arith.constant 0 : index
    %c0_0 = arith.constant 0 : index
    %c0_1 = arith.constant 0 : index
    %0 = vector.load %arg0[%c0, %c0_0, %c0_1] : memref<2x8x40xf32, #tpu.memory_space<vmem>>, vector<2x8x40xf32>
    %c0_2 = arith.constant 0 : index
    %c0_3 = arith.constant 0 : index
    %1 = vector.load %arg1[%c0_2, %c0_3] : memref<8x40xf32, #tpu.memory_space<vmem>>, vector<8x40xf32>
    %2 = vector.shape_cast %1 : vector<8x40xf32> to vector<1x8x40xf32>
    %3 = vector.broadcast %2 : vector<1x8x40xf32> to vector<2x8x40xf32>
    %4 = arith.addf %0, %3 : vector<2x8x40xf32>
    %5 = vector.shape_cast %4 : vector<2x8x40xf32> to vector<16x40xf32>
    %c0_4 = arith.constant 0 : index
    %c0_5 = arith.constant 0 : index
    %6 = vector.load %arg2[%c0_4, %c0_5] : memref<40x640xf32, #tpu.memory_space<vmem>>, vector<40x640xf32>
    %cst = arith.constant dense<0.000000e+00> : vector<16x640xf32>
    %7 = tpu.matmul %5, %6, %cst {dimension_numbers = #tpu.dot_dimension_numbers<[1], [0], [0], [1], [0, 0, 1, 1], [], []>} : vector<16x40xf32>, vector<40x640xf32>, vector<16x640xf32> -> vector<16x640xf32>
    %c0_6 = arith.constant 0 : index
    %c0_7 = arith.constant 0 : index
    %8 = vector.load %arg3[%c0_6, %c0_7] : memref<1x640xf32, #tpu.memory_space<vmem>>, vector<1x640xf32>
    %9 = vector.broadcast %8 : vector<1x640xf32> to vector<16x640xf32>
    %10 = arith.addf %7, %9 : vector<16x640xf32>
    %c0_8 = arith.constant 0 : index
    %c0_9 = arith.constant 0 : index
    %11 = vector.load %arg4[%c0_8, %c0_9] : memref<40x640xf32, #tpu.memory_space<vmem>>, vector<40x640xf32>
    %cst_10 = arith.constant dense<0.000000e+00> : vector<16x640xf32>
    %12 = tpu.matmul %5, %11, %cst_10 {dimension_numbers = #tpu.dot_dimension_numbers<[1], [0], [0], [1], [0, 0, 1, 1], [], []>} : vector<16x40xf32>, vector<40x640xf32>, vector<16x640xf32> -> vector<16x640xf32>
    %c0_11 = arith.constant 0 : index
    %c0_12 = arith.constant 0 : index
    %13 = vector.load %arg5[%c0_11, %c0_12] : memref<1x640xf32, #tpu.memory_space<vmem>>, vector<1x640xf32>
    %14 = vector.broadcast %13 : vector<1x640xf32> to vector<16x640xf32>
    %15 = arith.addf %12, %14 : vector<16x640xf32>
    %c0_13 = arith.constant 0 : index
    %c0_14 = arith.constant 0 : index
    %16 = vector.load %arg6[%c0_13, %c0_14] : memref<40x640xf32, #tpu.memory_space<vmem>>, vector<40x640xf32>
    %cst_15 = arith.constant dense<0.000000e+00> : vector<16x640xf32>
    %17 = tpu.matmul %5, %16, %cst_15 {dimension_numbers = #tpu.dot_dimension_numbers<[1], [0], [0], [1], [0, 0, 1, 1], [], []>} : vector<16x40xf32>, vector<40x640xf32>, vector<16x640xf32> -> vector<16x640xf32>
    %c0_16 = arith.constant 0 : index
    %c0_17 = arith.constant 0 : index
    %18 = vector.load %arg7[%c0_16, %c0_17] : memref<1x640xf32, #tpu.memory_space<vmem>>, vector<1x640xf32>
    %19 = vector.broadcast %18 : vector<1x640xf32> to vector<16x640xf32>
    %20 = arith.addf %17, %19 : vector<16x640xf32>
    %21 = vector.shape_cast %10 : vector<16x640xf32> to vector<2x8x640xf32>
    %22 = vector.shape_cast %15 : vector<16x640xf32> to vector<2x8x640xf32>
    %23 = vector.shape_cast %20 : vector<16x640xf32> to vector<2x8x640xf32>
    %cst_18 = arith.constant 0.000000e+00 : f32
    %24 = vector.broadcast %cst_18 : f32 to vector<16x40xf32>
    %25 = vector.extract_strided_slice %21 {offsets = [0, 0, 0], sizes = [2, 8, 128], strides = [1, 1, 1]} : vector<2x8x640xf32> to vector<2x8x128xf32>
    %26 = vector.extract_strided_slice %22 {offsets = [0, 0, 0], sizes = [2, 8, 128], strides = [1, 1, 1]} : vector<2x8x640xf32> to vector<2x8x128xf32>
    "tpu.trace_start"() <{level = 10 : i32, message = "bqd,bkd->bqk"}> : () -> ()
    %cst_19 = arith.constant dense<0.000000e+00> : vector<2x8x8xf32>
    %27 = tpu.matmul %25, %26, %cst_19 {dimension_numbers = #tpu.dot_dimension_numbers<[2], [2], [1], [1], [0, 0, 0, 1, 1, 1], [0], [0]>} : vector<2x8x128xf32>, vector<2x8x128xf32>, vector<2x8x8xf32> -> vector<2x8x8xf32>
    "tpu.trace_stop"() : () -> ()
    %cst_20 = arith.constant dense<0xFF800000> : vector<2x8xf32>
    %28 = vector.multi_reduction <maximumf>, %27, %cst_20 [2] : vector<2x8x8xf32> to vector<2x8xf32>
    %29 = vector.shape_cast %28 : vector<2x8xf32> to vector<2x8x1xf32>
    %30 = vector.broadcast %29 : vector<2x8x1xf32> to vector<2x8x8xf32>
    %31 = arith.subf %27, %30 : vector<2x8x8xf32>
    %32 = math.exp %31 : vector<2x8x8xf32>
    %cst_21 = arith.constant dense<0.000000e+00> : vector<2x8xf32>
    %33 = vector.multi_reduction <add>, %32, %cst_21 [2] : vector<2x8x8xf32> to vector<2x8xf32>
    %34 = vector.shape_cast %33 : vector<2x8xf32> to vector<2x8x1xf32>
    %35 = vector.broadcast %34 : vector<2x8x1xf32> to vector<2x8x8xf32>
    %36 = arith.divf %32, %35 : vector<2x8x8xf32>
    %37 = vector.extract_strided_slice %23 {offsets = [0, 0, 0], sizes = [2, 8, 128], strides = [1, 1, 1]} : vector<2x8x640xf32> to vector<2x8x128xf32>
    "tpu.trace_start"() <{level = 10 : i32, message = "bqk,bkd->bqd"}> : () -> ()
    %cst_22 = arith.constant dense<0.000000e+00> : vector<2x8x128xf32>
    %38 = tpu.matmul %36, %37, %cst_22 {dimension_numbers = #tpu.dot_dimension_numbers<[2], [1], [1], [2], [0, 0, 0, 1, 1, 2], [0], [0]>} : vector<2x8x8xf32>, vector<2x8x128xf32>, vector<2x8x128xf32> -> vector<2x8x128xf32>
    "tpu.trace_stop"() : () -> ()
    %39 = vector.shape_cast %38 : vector<2x8x128xf32> to vector<16x128xf32>
    %c0_23 = arith.constant 0 : index
    %c0_24 = arith.constant 0 : index
    %c0_25 = arith.constant 0 : index
    %40 = vector.load %arg8[%c0_23, %c0_24, %c0_25] : memref<5x128x40xf32, #tpu.memory_space<vmem>>, vector<1x128x40xf32>
    %41 = vector.shape_cast %40 : vector<1x128x40xf32> to vector<128x40xf32>
    %cst_26 = arith.constant dense<0.000000e+00> : vector<16x40xf32>
    %42 = tpu.matmul %39, %41, %cst_26 {dimension_numbers = #tpu.dot_dimension_numbers<[1], [0], [0], [1], [0, 0, 1, 1], [], []>} : vector<16x128xf32>, vector<128x40xf32>, vector<16x40xf32> -> vector<16x40xf32>
    %43 = arith.addf %24, %42 : vector<16x40xf32>
    %44 = vector.extract_strided_slice %21 {offsets = [0, 0, 128], sizes = [2, 8, 128], strides = [1, 1, 1]} : vector<2x8x640xf32> to vector<2x8x128xf32>
    %45 = vector.extract_strided_slice %22 {offsets = [0, 0, 128], sizes = [2, 8, 128], strides = [1, 1, 1]} : vector<2x8x640xf32> to vector<2x8x128xf32>
    "tpu.trace_start"() <{level = 10 : i32, message = "bqd,bkd->bqk"}> : () -> ()
    %cst_27 = arith.constant dense<0.000000e+00> : vector<2x8x8xf32>
    %46 = tpu.matmul %44, %45, %cst_27 {dimension_numbers = #tpu.dot_dimension_numbers<[2], [2], [1], [1], [0, 0, 0, 1, 1, 1], [0], [0]>} : vector<2x8x128xf32>, vector<2x8x128xf32>, vector<2x8x8xf32> -> vector<2x8x8xf32>
    "tpu.trace_stop"() : () -> ()
    %cst_28 = arith.constant dense<0xFF800000> : vector<2x8xf32>
    %47 = vector.multi_reduction <maximumf>, %46, %cst_28 [2] : vector<2x8x8xf32> to vector<2x8xf32>
    %48 = vector.shape_cast %47 : vector<2x8xf32> to vector<2x8x1xf32>
    %49 = vector.broadcast %48 : vector<2x8x1xf32> to vector<2x8x8xf32>
    %50 = arith.subf %46, %49 : vector<2x8x8xf32>
    %51 = math.exp %50 : vector<2x8x8xf32>
    %cst_29 = arith.constant dense<0.000000e+00> : vector<2x8xf32>
    %52 = vector.multi_reduction <add>, %51, %cst_29 [2] : vector<2x8x8xf32> to vector<2x8xf32>
    %53 = vector.shape_cast %52 : vector<2x8xf32> to vector<2x8x1xf32>
    %54 = vector.broadcast %53 : vector<2x8x1xf32> to vector<2x8x8xf32>
    %55 = arith.divf %51, %54 : vector<2x8x8xf32>
    %56 = vector.extract_strided_slice %23 {offsets = [0, 0, 128], sizes = [2, 8, 128], strides = [1, 1, 1]} : vector<2x8x640xf32> to vector<2x8x128xf32>
    "tpu.trace_start"() <{level = 10 : i32, message = "bqk,bkd->bqd"}> : () -> ()
    %cst_30 = arith.constant dense<0.000000e+00> : vector<2x8x128xf32>
    %57 = tpu.matmul %55, %56, %cst_30 {dimension_numbers = #tpu.dot_dimension_numbers<[2], [1], [1], [2], [0, 0, 0, 1, 1, 2], [0], [0]>} : vector<2x8x8xf32>, vector<2x8x128xf32>, vector<2x8x128xf32> -> vector<2x8x128xf32>
    "tpu.trace_stop"() : () -> ()
    %58 = vector.shape_cast %57 : vector<2x8x128xf32> to vector<16x128xf32>
    %c1 = arith.constant 1 : index
    %c0_31 = arith.constant 0 : index
    %c0_32 = arith.constant 0 : index
    %59 = vector.load %arg8[%c1, %c0_31, %c0_32] : memref<5x128x40xf32, #tpu.memory_space<vmem>>, vector<1x128x40xf32>
    %60 = vector.shape_cast %59 : vector<1x128x40xf32> to vector<128x40xf32>
    %cst_33 = arith.constant dense<0.000000e+00> : vector<16x40xf32>
    %61 = tpu.matmul %58, %60, %cst_33 {dimension_numbers = #tpu.dot_dimension_numbers<[1], [0], [0], [1], [0, 0, 1, 1], [], []>} : vector<16x128xf32>, vector<128x40xf32>, vector<16x40xf32> -> vector<16x40xf32>
    %62 = arith.addf %43, %61 : vector<16x40xf32>
    %63 = vector.extract_strided_slice %21 {offsets = [0, 0, 256], sizes = [2, 8, 128], strides = [1, 1, 1]} : vector<2x8x640xf32> to vector<2x8x128xf32>
    %64 = vector.extract_strided_slice %22 {offsets = [0, 0, 256], sizes = [2, 8, 128], strides = [1, 1, 1]} : vector<2x8x640xf32> to vector<2x8x128xf32>
    "tpu.trace_start"() <{level = 10 : i32, message = "bqd,bkd->bqk"}> : () -> ()
    %cst_34 = arith.constant dense<0.000000e+00> : vector<2x8x8xf32>
    %65 = tpu.matmul %63, %64, %cst_34 {dimension_numbers = #tpu.dot_dimension_numbers<[2], [2], [1], [1], [0, 0, 0, 1, 1, 1], [0], [0]>} : vector<2x8x128xf32>, vector<2x8x128xf32>, vector<2x8x8xf32> -> vector<2x8x8xf32>
    "tpu.trace_stop"() : () -> ()
    %cst_35 = arith.constant dense<0xFF800000> : vector<2x8xf32>
    %66 = vector.multi_reduction <maximumf>, %65, %cst_35 [2] : vector<2x8x8xf32> to vector<2x8xf32>
    %67 = vector.shape_cast %66 : vector<2x8xf32> to vector<2x8x1xf32>
    %68 = vector.broadcast %67 : vector<2x8x1xf32> to vector<2x8x8xf32>
    %69 = arith.subf %65, %68 : vector<2x8x8xf32>
    %70 = math.exp %69 : vector<2x8x8xf32>
    %cst_36 = arith.constant dense<0.000000e+00> : vector<2x8xf32>
    %71 = vector.multi_reduction <add>, %70, %cst_36 [2] : vector<2x8x8xf32> to vector<2x8xf32>
    %72 = vector.shape_cast %71 : vector<2x8xf32> to vector<2x8x1xf32>
    %73 = vector.broadcast %72 : vector<2x8x1xf32> to vector<2x8x8xf32>
    %74 = arith.divf %70, %73 : vector<2x8x8xf32>
    %75 = vector.extract_strided_slice %23 {offsets = [0, 0, 256], sizes = [2, 8, 128], strides = [1, 1, 1]} : vector<2x8x640xf32> to vector<2x8x128xf32>
    "tpu.trace_start"() <{level = 10 : i32, message = "bqk,bkd->bqd"}> : () -> ()
    %cst_37 = arith.constant dense<0.000000e+00> : vector<2x8x128xf32>
    %76 = tpu.matmul %74, %75, %cst_37 {dimension_numbers = #tpu.dot_dimension_numbers<[2], [1], [1], [2], [0, 0, 0, 1, 1, 2], [0], [0]>} : vector<2x8x8xf32>, vector<2x8x128xf32>, vector<2x8x128xf32> -> vector<2x8x128xf32>
    "tpu.trace_stop"() : () -> ()
    %77 = vector.shape_cast %76 : vector<2x8x128xf32> to vector<16x128xf32>
    %c2 = arith.constant 2 : index
    %c0_38 = arith.constant 0 : index
    %c0_39 = arith.constant 0 : index
    %78 = vector.load %arg8[%c2, %c0_38, %c0_39] : memref<5x128x40xf32, #tpu.memory_space<vmem>>, vector<1x128x40xf32>
    %79 = vector.shape_cast %78 : vector<1x128x40xf32> to vector<128x40xf32>
    %cst_40 = arith.constant dense<0.000000e+00> : vector<16x40xf32>
    %80 = tpu.matmul %77, %79, %cst_40 {dimension_numbers = #tpu.dot_dimension_numbers<[1], [0], [0], [1], [0, 0, 1, 1], [], []>} : vector<16x128xf32>, vector<128x40xf32>, vector<16x40xf32> -> vector<16x40xf32>
    %81 = arith.addf %62, %80 : vector<16x40xf32>
    %82 = vector.extract_strided_slice %21 {offsets = [0, 0, 384], sizes = [2, 8, 128], strides = [1, 1, 1]} : vector<2x8x640xf32> to vector<2x8x128xf32>
    %83 = vector.extract_strided_slice %22 {offsets = [0, 0, 384], sizes = [2, 8, 128], strides = [1, 1, 1]} : vector<2x8x640xf32> to vector<2x8x128xf32>
    "tpu.trace_start"() <{level = 10 : i32, message = "bqd,bkd->bqk"}> : () -> ()
    %cst_41 = arith.constant dense<0.000000e+00> : vector<2x8x8xf32>
    %84 = tpu.matmul %82, %83, %cst_41 {dimension_numbers = #tpu.dot_dimension_numbers<[2], [2], [1], [1], [0, 0, 0, 1, 1, 1], [0], [0]>} : vector<2x8x128xf32>, vector<2x8x128xf32>, vector<2x8x8xf32> -> vector<2x8x8xf32>
    "tpu.trace_stop"() : () -> ()
    %cst_42 = arith.constant dense<0xFF800000> : vector<2x8xf32>
    %85 = vector.multi_reduction <maximumf>, %84, %cst_42 [2] : vector<2x8x8xf32> to vector<2x8xf32>
    %86 = vector.shape_cast %85 : vector<2x8xf32> to vector<2x8x1xf32>
    %87 = vector.broadcast %86 : vector<2x8x1xf32> to vector<2x8x8xf32>
    %88 = arith.subf %84, %87 : vector<2x8x8xf32>
    %89 = math.exp %88 : vector<2x8x8xf32>
    %cst_43 = arith.constant dense<0.000000e+00> : vector<2x8xf32>
    %90 = vector.multi_reduction <add>, %89, %cst_43 [2] : vector<2x8x8xf32> to vector<2x8xf32>
    %91 = vector.shape_cast %90 : vector<2x8xf32> to vector<2x8x1xf32>
    %92 = vector.broadcast %91 : vector<2x8x1xf32> to vector<2x8x8xf32>
    %93 = arith.divf %89, %92 : vector<2x8x8xf32>
    %94 = vector.extract_strided_slice %23 {offsets = [0, 0, 384], sizes = [2, 8, 128], strides = [1, 1, 1]} : vector<2x8x640xf32> to vector<2x8x128xf32>
    "tpu.trace_start"() <{level = 10 : i32, message = "bqk,bkd->bqd"}> : () -> ()
    %cst_44 = arith.constant dense<0.000000e+00> : vector<2x8x128xf32>
    %95 = tpu.matmul %93, %94, %cst_44 {dimension_numbers = #tpu.dot_dimension_numbers<[2], [1], [1], [2], [0, 0, 0, 1, 1, 2], [0], [0]>} : vector<2x8x8xf32>, vector<2x8x128xf32>, vector<2x8x128xf32> -> vector<2x8x128xf32>
    "tpu.trace_stop"() : () -> ()
    %96 = vector.shape_cast %95 : vector<2x8x128xf32> to vector<16x128xf32>
    %c3 = arith.constant 3 : index
    %c0_45 = arith.constant 0 : index
    %c0_46 = arith.constant 0 : index
    %97 = vector.load %arg8[%c3, %c0_45, %c0_46] : memref<5x128x40xf32, #tpu.memory_space<vmem>>, vector<1x128x40xf32>
    %98 = vector.shape_cast %97 : vector<1x128x40xf32> to vector<128x40xf32>
    %cst_47 = arith.constant dense<0.000000e+00> : vector<16x40xf32>
    %99 = tpu.matmul %96, %98, %cst_47 {dimension_numbers = #tpu.dot_dimension_numbers<[1], [0], [0], [1], [0, 0, 1, 1], [], []>} : vector<16x128xf32>, vector<128x40xf32>, vector<16x40xf32> -> vector<16x40xf32>
    %100 = arith.addf %81, %99 : vector<16x40xf32>
    %101 = vector.extract_strided_slice %21 {offsets = [0, 0, 512], sizes = [2, 8, 128], strides = [1, 1, 1]} : vector<2x8x640xf32> to vector<2x8x128xf32>
    %102 = vector.extract_strided_slice %22 {offsets = [0, 0, 512], sizes = [2, 8, 128], strides = [1, 1, 1]} : vector<2x8x640xf32> to vector<2x8x128xf32>
    "tpu.trace_start"() <{level = 10 : i32, message = "bqd,bkd->bqk"}> : () -> ()
    %cst_48 = arith.constant dense<0.000000e+00> : vector<2x8x8xf32>
    %103 = tpu.matmul %101, %102, %cst_48 {dimension_numbers = #tpu.dot_dimension_numbers<[2], [2], [1], [1], [0, 0, 0, 1, 1, 1], [0], [0]>} : vector<2x8x128xf32>, vector<2x8x128xf32>, vector<2x8x8xf32> -> vector<2x8x8xf32>
    "tpu.trace_stop"() : () -> ()
    %cst_49 = arith.constant dense<0xFF800000> : vector<2x8xf32>
    %104 = vector.multi_reduction <maximumf>, %103, %cst_49 [2] : vector<2x8x8xf32> to vector<2x8xf32>
    %105 = vector.shape_cast %104 : vector<2x8xf32> to vector<2x8x1xf32>
    %106 = vector.broadcast %105 : vector<2x8x1xf32> to vector<2x8x8xf32>
    %107 = arith.subf %103, %106 : vector<2x8x8xf32>
    %108 = math.exp %107 : vector<2x8x8xf32>
    %cst_50 = arith.constant dense<0.000000e+00> : vector<2x8xf32>
    %109 = vector.multi_reduction <add>, %108, %cst_50 [2] : vector<2x8x8xf32> to vector<2x8xf32>
    %110 = vector.shape_cast %109 : vector<2x8xf32> to vector<2x8x1xf32>
    %111 = vector.broadcast %110 : vector<2x8x1xf32> to vector<2x8x8xf32>
    %112 = arith.divf %108, %111 : vector<2x8x8xf32>
    %113 = vector.extract_strided_slice %23 {offsets = [0, 0, 512], sizes = [2, 8, 128], strides = [1, 1, 1]} : vector<2x8x640xf32> to vector<2x8x128xf32>
    "tpu.trace_start"() <{level = 10 : i32, message = "bqk,bkd->bqd"}> : () -> ()
    %cst_51 = arith.constant dense<0.000000e+00> : vector<2x8x128xf32>
    %114 = tpu.matmul %112, %113, %cst_51 {dimension_numbers = #tpu.dot_dimension_numbers<[2], [1], [1], [2], [0, 0, 0, 1, 1, 2], [0], [0]>} : vector<2x8x8xf32>, vector<2x8x128xf32>, vector<2x8x128xf32> -> vector<2x8x128xf32>
    "tpu.trace_stop"() : () -> ()
    %115 = vector.shape_cast %114 : vector<2x8x128xf32> to vector<16x128xf32>
    %c4 = arith.constant 4 : index
    %c0_52 = arith.constant 0 : index
    %c0_53 = arith.constant 0 : index
    %116 = vector.load %arg8[%c4, %c0_52, %c0_53] : memref<5x128x40xf32, #tpu.memory_space<vmem>>, vector<1x128x40xf32>
    %117 = vector.shape_cast %116 : vector<1x128x40xf32> to vector<128x40xf32>
    %cst_54 = arith.constant dense<0.000000e+00> : vector<16x40xf32>
    %118 = tpu.matmul %115, %117, %cst_54 {dimension_numbers = #tpu.dot_dimension_numbers<[1], [0], [0], [1], [0, 0, 1, 1], [], []>} : vector<16x128xf32>, vector<128x40xf32>, vector<16x40xf32> -> vector<16x40xf32>
    %119 = arith.addf %100, %118 : vector<16x40xf32>
    %120 = arith.addf %5, %119 : vector<16x40xf32>
    %c0_55 = arith.constant 0 : index
    %c0_56 = arith.constant 0 : index
    %121 = vector.load %arg9[%c0_55, %c0_56] : memref<1x40xf32, #tpu.memory_space<vmem>>, vector<1x40xf32>
    %122 = vector.broadcast %121 : vector<1x40xf32> to vector<16x40xf32>
    %123 = arith.addf %120, %122 : vector<16x40xf32>
    %cst_57 = arith.constant dense<0.000000e+00> : vector<16xf32>
    %124 = vector.multi_reduction <add>, %123, %cst_57 [1] : vector<16x40xf32> to vector<16xf32>
    %125 = vector.shape_cast %124 : vector<16xf32> to vector<16x1xf32>
    %cst_58 = arith.constant 4.000000e+01 : f32
    %126 = vector.broadcast %cst_58 : f32 to vector<16x1xf32>
    %127 = arith.divf %125, %126 : vector<16x1xf32>
    %128 = vector.broadcast %127 : vector<16x1xf32> to vector<16x40xf32>
    %129 = arith.subf %123, %128 : vector<16x40xf32>
    %130 = arith.mulf %129, %129 : vector<16x40xf32>
    %cst_59 = arith.constant dense<0.000000e+00> : vector<16xf32>
    %131 = vector.multi_reduction <add>, %130, %cst_59 [1] : vector<16x40xf32> to vector<16xf32>
    %132 = vector.shape_cast %131 : vector<16xf32> to vector<16x1xf32>
    %cst_60 = arith.constant 4.000000e+01 : f32
    %133 = vector.broadcast %cst_60 : f32 to vector<16x1xf32>
    %134 = arith.divf %132, %133 : vector<16x1xf32>
    %135 = vector.broadcast %127 : vector<16x1xf32> to vector<16x40xf32>
    %136 = arith.subf %123, %135 : vector<16x40xf32>
    %cst_61 = arith.constant 9.99999974E-6 : f32
    %137 = vector.broadcast %cst_61 : f32 to vector<16x1xf32>
    %138 = arith.addf %134, %137 : vector<16x1xf32>
    %139 = math.rsqrt %138 : vector<16x1xf32>
    %140 = vector.broadcast %139 : vector<16x1xf32> to vector<16x40xf32>
    %141 = arith.mulf %136, %140 : vector<16x40xf32>
    %c0_62 = arith.constant 0 : index
    %c0_63 = arith.constant 0 : index
    %142 = vector.load %arg10[%c0_62, %c0_63] : memref<1x40xf32, #tpu.memory_space<vmem>>, vector<1x40xf32>
    %143 = vector.broadcast %142 : vector<1x40xf32> to vector<16x40xf32>
    %144 = arith.mulf %141, %143 : vector<16x40xf32>
    %c0_64 = arith.constant 0 : index
    %c0_65 = arith.constant 0 : index
    %145 = vector.load %arg11[%c0_64, %c0_65] : memref<1x40xf32, #tpu.memory_space<vmem>>, vector<1x40xf32>
    %146 = vector.broadcast %145 : vector<1x40xf32> to vector<16x40xf32>
    %147 = arith.addf %144, %146 : vector<16x40xf32>
    %148 = vector.shape_cast %147 : vector<16x40xf32> to vector<2x8x40xf32>
    %c0_66 = arith.constant 0 : index
    %c0_67 = arith.constant 0 : index
    %c0_68 = arith.constant 0 : index
    %149 = vector.load %arg12[%c0_66, %c0_67, %c0_68] : memref<2x8x40xf32, #tpu.memory_space<vmem>>, vector<1x8x40xf32>
    %150 = vector.shape_cast %149 : vector<1x8x40xf32> to vector<8x40xf32>
    %151 = vector.shape_cast %150 : vector<8x40xf32> to vector<1x8x40xf32>
    %152 = vector.broadcast %151 : vector<1x8x40xf32> to vector<2x8x40xf32>
    %153 = arith.mulf %148, %152 : vector<2x8x40xf32>
    %cst_69 = arith.constant dense<0.000000e+00> : vector<2x8xf32>
    %154 = vector.multi_reduction <add>, %153, %cst_69 [2] : vector<2x8x40xf32> to vector<2x8xf32>
    %cst_70 = arith.constant dense<0.000000e+00> : vector<2xf32>
    %155 = vector.multi_reduction <add>, %154, %cst_70 [1] : vector<2x8xf32> to vector<2xf32>
    %156 = vector.shape_cast %155 : vector<2xf32> to vector<2x1xf32>
    %c1_71 = arith.constant 1 : index
    %c0_72 = arith.constant 0 : index
    %c0_73 = arith.constant 0 : index
    %157 = vector.load %arg12[%c1_71, %c0_72, %c0_73] : memref<2x8x40xf32, #tpu.memory_space<vmem>>, vector<1x8x40xf32>
    %158 = vector.shape_cast %157 : vector<1x8x40xf32> to vector<8x40xf32>
    %159 = vector.shape_cast %158 : vector<8x40xf32> to vector<1x8x40xf32>
    %160 = vector.broadcast %159 : vector<1x8x40xf32> to vector<2x8x40xf32>
    %161 = arith.mulf %148, %160 : vector<2x8x40xf32>
    %cst_74 = arith.constant dense<0.000000e+00> : vector<2x8xf32>
    %162 = vector.multi_reduction <add>, %161, %cst_74 [2] : vector<2x8x40xf32> to vector<2x8xf32>
    %cst_75 = arith.constant dense<0.000000e+00> : vector<2xf32>
    %163 = vector.multi_reduction <add>, %162, %cst_75 [1] : vector<2x8xf32> to vector<2xf32>
    %164 = vector.shape_cast %163 : vector<2xf32> to vector<2x1xf32>
    %165 = tpu.concatenate %156, %164 in 1 : vector<2x1xf32>, vector<2x1xf32> -> vector<2x2xf32>
    %c0_76 = arith.constant 0 : index
    %c0_77 = arith.constant 0 : index
    %166 = vector.load %arg13[%c0_76, %c0_77] : memref<1x2xf32, #tpu.memory_space<vmem>>, vector<1x2xf32>
    %167 = vector.broadcast %166 : vector<1x2xf32> to vector<2x2xf32>
    %168 = arith.addf %165, %167 : vector<2x2xf32>
    %c0_78 = arith.constant 0 : index
    %c0_79 = arith.constant 0 : index
    %169 = vector.load %arg14[%c0_78, %c0_79] : memref<2x2xf32, #tpu.memory_space<vmem>>, vector<2x2xf32>
    tpu.vector_store %arg14[%c0_78, %c0_79], %168 {strides = array<i32>} : memref<2x2xf32, #tpu.memory_space<vmem>>, vector<2x2xf32>,
    return
  }
}

</mosaic_0001>

<bundles_post_ra>
// kernel: tpu_custom_call.1
= control target key start
LH: loop header
LB: loop body
LE: loop exit
PB: predicated region body
PF: predicated region fallthrough
CT: control target
= control target key end

     0   :  { %vm90_vm0 = vcmask 326656   ;;  %s2528_s0 = inlined_call_operand.vmem [shape: f32[2,8,40], index: 0, kind: input, shape index: {}]   ;;  %s2529_s1 = inlined_call_operand.vmem [shape: f32[8,40], index: 1, kind: input, shape index: {}]   ;;  %s2530_s2 = inlined_call_operand.vmem [shape: f32[40,640], index: 2, kind: input, shape index: {}]   ;;  %s2531_s3 = inlined_call_operand.vmem [shape: f32[1,640], index: 3, kind: input, shape index: {}]   ;;  %s2532_s4 = inlined_call_operand.vmem [shape: f32[40,640], index: 4, kind: input, shape index: {}]   ;;  %s2533_s5 = inlined_call_operand.vmem [shape: f32[1,640], index: 5, kind: input, shape index: {}]   ;;  %s2534_s6 = inlined_call_operand.vmem [shape: f32[40,640], index: 6, kind: input, shape index: {}]   ;;  %s2535_s7 = inlined_call_operand.vmem [shape: f32[1,640], index: 7, kind: input, shape index: {}]   ;;  %s2536_s8 = inlined_call_operand.vmem [shape: f32[5,128,40], index: 8, kind: input, shape index: {}]   ;;  %s2537_s9 = inlined_call_operand.vmem [shape: f32[1,40], index: 9, kind: input, shape index: {}]   ;;  %s2538_s10 = inlined_call_operand.vmem [shape: f32[1,40], index: 10, kind: input, shape index: {}]   ;;  %s2539_s11 = inlined_call_operand.vmem [shape: f32[1,40], index: 11, kind: input, shape index: {}]   ;;  %s2540_s12 = inlined_call_operand.vmem [shape: f32[2,8,40], index: 12, kind: input, shape index: {}]   ;;  %s2541_s13 = inlined_call_operand.vmem [shape: f32[1,2], index: 13, kind: input, shape index: {}]   ;;  %s2542_s14 = inlined_call_operand.hbm [shape: f32[2,2], index: 14, kind: output, shape index: {}]  }
   0x1   :  { %v73_v0 = vld [vmem:[%s2530_s2 + $0xa0] sm:$0xff]  ;;  %v68_v1 = vld [vmem:[%s2530_s2 + $0x78] sm:$0xff]  ;;  %v63_v2 = vld [vmem:[%s2530_s2 + $0x50] sm:$0xff] }
   0x2   :  { %108 = vmatpush.msra.mxu1 %v73_v0  ;;  %v75_v3 = vld [vmem:[%s2530_s2 + $0xb0] sm:$0xff]  ;;  %v70_v4 = vld [vmem:[%s2530_s2 + $0x88] sm:$0xff]  ;;  %v48_v5 = vld [vmem:[%s2528_s0] sm:$0xff] }
   0x3   :  { %v50_v6 = vld [vmem:[%s2529_s1] sm:$0xff]  ;;  %154 = vmatpush.msra.mxu2 %v75_v3  ;;  %v58_v7 = vld [vmem:[%s2530_s2 + $0x28] sm:$0xff]  ;;  %v60_v11 = vld [vmem:[%s2530_s2 + $0x38] sm:$0xff] }
   0x4   :  { %109 = vmatpush.msra.mxu1 %v68_v1  ;;  %v65_v8 = vld [vmem:[%s2530_s2 + $0x60] sm:$0xff]  ;;  %v1819_v10 = vadd.f32 %v50_v6, %v48_v5  ;;  %v74_v12 = vld [vmem:[%s2530_s2 + $0xa8] sm:$0xff]  ;;  %v55_v13 = vld [vmem:[%s2530_s2 + $0x10] sm:$0xff] }
   0x5   :  { %155 = vmatpush.msra.mxu2 %v70_v4  ;;  %v53_v9 = vld [vmem:[%s2530_s2] sm:$0xff]  ;;  %v49_v14 = vld [vmem:[%s2528_s0 + $0x8] sm:$0xff]  ;;  %v64_v16 = vld [vmem:[%s2530_s2 + $0x58] sm:$0xff] }
   0x6   :  { %110 = vmatpush.msra.mxu1 %v63_v2  ;;  %v69_v15 = vld [vmem:[%s2530_s2 + $0x80] sm:$0xff]  ;;  %v233_v17 = vld [vmem:[%s2532_s4 + $0xa8] sm:$0xff] }
   0x7   :  { %156 = vmatpush.msra.mxu2 %v65_v8  ;;  %v228_v18 = vld [vmem:[%s2532_s4 + $0x80] sm:$0xff] }
   0x8   :  { %111 = vmatpush.msra.mxu1 %v58_v7 }
   0x9   :  { %157 = vmatpush.msra.mxu2 %v60_v11 }
   0xa   :  { %112 = vmatpush.msra.mxu1 %v53_v9 }
   0xb   :  { %1529 = vmatmul.msk.f32.vlgmr.msra.gmra.mxu1 %vm90_vm0, %v1819_v10  ;;  %158 = vmatpush.msra.mxu2 %v55_v13 }
   0xc   :  { %131 = vmatpush.msrb.mxu1 %v74_v12  ;;  %1533 = vmatmul.msk.f32.vlgmr.msra.gmra.mxu2 %vm90_vm0, %v1819_v10 }
   0xd   :  { %19 = vsyncpa [#allocation3], 0  ;;  %283 = vmatpush.msrb.mxu2 %v233_v17  ;;  %v1849_v19 = vadd.f32 %v50_v6, %v49_v14  ;;  %v59_v20 = vld [vmem:[%s2530_s2 + $0x30] sm:$0xff]  ;;  %v223_v21 = vld [vmem:[%s2532_s4 + $0x58] sm:$0xff]  ;;  %vm556_vm1 = vcmask 64512   ;;  %s1520_s24 = sshll.u32 %s2542_s14, 4  ;;  %s1521_s24 = int_to_ptr.hbm [resolvable:$true] %s1520_s24 }
   0xe   :  { %132 = vmatpush.msrb.mxu1 %v69_v15  ;;  %v54_v22 = vld [vmem:[%s2530_s2 + $0x8] sm:$0xff]  ;;  %v218_v23 = vld [vmem:[%s2532_s4 + $0x30] sm:$0xff]  ;;  %v232_v24 = vld [vmem:[%s2532_s4 + $0xa0] sm:$0xff] }
   0xf   :  { %284 = vmatpush.msrb.mxu2 %v228_v18  ;;  %v213_v25 = vld [vmem:[%s2532_s4 + $0x8] sm:$0xff]  ;;  %v76_v26 = vld [vmem:[%s2530_s2 + $0xb8] sm:$0xff]  ;;  %v384_v28 = vld [vmem:[%s2534_s6 + $0xa0] sm:$0xff] }
  0x10   :  { %133 = vmatpush.msrb.mxu1 %v64_v16  ;;  %v227_v27 = vld [vmem:[%s2532_s4 + $0x78] sm:$0xff]  ;;  %v71_v29 = vld [vmem:[%s2530_s2 + $0x90] sm:$0xff]  ;;  %177 = vmatpush.msra.mxu3 %v76_v26  ;;  %v66_v32 = vld [vmem:[%s2530_s2 + $0x68] sm:$0xff] }
  0x11   :  { %285 = vmatpush.msrb.mxu2 %v223_v21  ;;  %v222_v30 = vld [vmem:[%s2532_s4 + $0x50] sm:$0xff]  ;;  %v379_v31 = vld [vmem:[%s2534_s6 + $0x78] sm:$0xff]  ;;  %v217_v34 = vld [vmem:[%s2532_s4 + $0x28] sm:$0xff] }
  0x12   :  { %134 = vmatpush.msrb.mxu1 %v59_v20  ;;  %v374_v33 = vld [vmem:[%s2534_s6 + $0x50] sm:$0xff]  ;;  %178 = vmatpush.msra.mxu3 %v71_v29  ;;  %v61_v35 = vld [vmem:[%s2530_s2 + $0x40] sm:$0xff]  ;;  %v369_v37 = vld [vmem:[%s2534_s6 + $0x28] sm:$0xff] }
  0x13   :  { %1530 = vmatmul.msk.f32.gmra.mxu1 %vm90_vm0, %v1849_v19  ;;  %286 = vmatpush.msrb.mxu2 %v218_v23  ;;  %v212_v36 = vld [vmem:[%s2532_s4] sm:$0xff]  ;;  %v56_v38 = vld [vmem:[%s2530_s2 + $0x18] sm:$0xff]  ;;  %v234_v40 = vld [vmem:[%s2532_s4 + $0xb0] sm:$0xff] }
  0x14   :  { %135 = vmatpush.msrb.mxu1 %v54_v22  ;;  %1534 = vmatmul.msk.f32.gmra.mxu2 %vm90_vm0, %v1849_v19  ;;  %v364_v39 = vld [vmem:[%s2534_s6] sm:$0xff]  ;;  %v229_v41 = vld [vmem:[%s2532_s4 + $0x88] sm:$0xff]  ;;  %v219_v43 = vld [vmem:[%s2532_s4 + $0x38] sm:$0xff] }
  0x15   :  { %287 = vmatpush.msrb.mxu2 %v213_v25  ;;  %179 = vmatpush.msra.mxu3 %v66_v32  ;;  %v224_v42 = vld [vmem:[%s2532_s4 + $0x60] sm:$0xff]  ;;  %v214_v44 = vld [vmem:[%s2532_s4 + $0x10] sm:$0xff]  ;;  %v385_v45 = vld [vmem:[%s2534_s6 + $0xa8] sm:$0xff] }
  0x16   :  { %260 = vmatpush.msra.mxu1 %v232_v24  ;;  %v380_v46 = vld [vmem:[%s2534_s6 + $0x80] sm:$0xff]  ;;  %v375_v47 = vld [vmem:[%s2534_s6 + $0x58] sm:$0xff]  ;;  %v370_v48 = vld [vmem:[%s2534_s6 + $0x30] sm:$0xff] }
  0x17   :  { %412 = vmatpush.msra.mxu2 %v384_v28  ;;  %180 = vmatpush.msra.mxu3 %v61_v35  ;;  %v365_v49 = vld [vmem:[%s2534_s6 + $0x8] sm:$0xff]  ;;  %v388_v51 = vld [vmem:[%s2534_s6 + $0xc0] sm:$0xff]  ;;  %v383_v52 = vld [vmem:[%s2534_s6 + $0x98] sm:$0xff] }
  0x18   :  { %261 = vmatpush.msra.mxu1 %v227_v27  ;;  %v1982_v53 = vld [vmem:[%s2531_s3] sm:$0x1f]  ;;  %v378_v55 = vld [vmem:[%s2534_s6 + $0x70] sm:$0xff]  ;;  %v373_v56 = vld [vmem:[%s2534_s6 + $0x48] sm:$0xff] }
  0x19   :  { %413 = vmatpush.msra.mxu2 %v379_v31  ;;  %181 = vmatpush.msra.mxu3 %v56_v38  ;;  %v82_v54 = vperm.slane %v1982_v53, 2  ;;  %v368_v60 = vld [vmem:[%s2534_s6 + $0x20] sm:$0xff]  ;;  %v81_v61 = vperm.slane %v1982_v53, 1  ;;  %v72_v2 = vld [vmem:[%s2530_s2 + $0x98] sm:$0xff]  ;;  %v67_v5 = vld [vmem:[%s2530_s2 + $0x70] sm:$0xff]  ;;  %v80_v12 = vperm.slane %v1982_v53, 0 }
  0x1a   :  { %262 = vmatpush.msra.mxu1 %v222_v30  ;;  %1535 = vmatmul.msk.f32.vlgmr.msra.gmra.mxu3 %vm90_vm0, %v1819_v10  ;;  %v77_v1 = vld [vmem:[%s2530_s2 + $0xc0] sm:$0xff]  ;;  %v62_v7 = vld [vmem:[%s2530_s2 + $0x48] sm:$0xff]  ;;  %v235_v11 = vld [vmem:[%s2532_s4 + $0xb8] sm:$0xff] }
  0x1b   :  { %1531 = vmatmul.msk.f32.vlgmr.msrb.gmra.mxu1 %vm90_vm0, %v1819_v10  ;;  %414 = vmatpush.msra.mxu2 %v374_v33  ;;  %v2019_v6 = vld [vmem:[%s2533_s5] sm:$0x1f]  ;;  %v230_v15 = vld [vmem:[%s2532_s4 + $0x90] sm:$0xff]  ;;  %v225_v18 = vld [vmem:[%s2532_s4 + $0x68] sm:$0xff] }
  0x1c   :  { %263 = vmatpush.msra.mxu1 %v217_v34  ;;  %1541 = vmatmul.msk.f32.vlgmr.msrb.gmra.mxu2 %vm90_vm0, %v1819_v10  ;;  %v57_v8 = vld [vmem:[%s2530_s2 + $0x20] sm:$0xff]  ;;  %v239_v9 = vperm.slane %v2019_v6, 0  ;;  %v240_v21 = vperm.slane %v2019_v6, 1  ;;  %v215_v32 = vld [vmem:[%s2532_s4 + $0x18] sm:$0xff]  ;;  %v386_v33 = vld [vmem:[%s2534_s6 + $0xb0] sm:$0xff] }
  0x1d   :  { %415 = vmatpush.msra.mxu2 %v369_v37  ;;  %306 = vmatpush.msrb.mxu3 %v234_v40  ;;  %v2040_v17 = vld [vmem:[%s2535_s7] sm:$0x1f]  ;;  %v381_v34 = vld [vmem:[%s2534_s6 + $0x88] sm:$0xff]  ;;  %v371_v37 = vld [vmem:[%s2534_s6 + $0x38] sm:$0xff] }
  0x1e   :  { %264 = vmatpush.msra.mxu1 %v212_v36  ;;  %200 = vmatpush.msra.mxu0 %v77_v1  ;;  %v391_v22 = vperm.slane %v2040_v17, 0  ;;  %v220_v31 = vld [vmem:[%s2532_s4 + $0x40] sm:$0xff]  ;;  %v366_v38 = vld [vmem:[%s2534_s6 + $0x10] sm:$0xff]  ;;  %v231_v40 = vld [vmem:[%s2532_s4 + $0x98] sm:$0xff] }
  0x1f   :  { %416 = vmatpush.msra.mxu2 %v364_v39  ;;  %307 = vmatpush.msrb.mxu3 %v229_v41  ;;  %v376_v35 = vld [vmem:[%s2534_s6 + $0x60] sm:$0xff]  ;;  %v226_v41 = vld [vmem:[%s2532_s4 + $0x70] sm:$0xff] }
  0x20   :  { %201 = vmatpush.msra.mxu0 %v72_v2  ;;  %v236_v39 = vld [vmem:[%s2532_s4 + $0xc0] sm:$0xff]  ;;  %v367_v2 = vld [vmem:[%s2534_s6 + $0x18] sm:$0xff] }
  0x21   :  { %308 = vmatpush.msrb.mxu3 %v224_v42  ;;  %504 = vmatpush.msrb.mxu2 %v388_v51  ;;  %v392_v51 = vperm.slane %v2040_v17, 1 }
  0x22   :  { %1536 = vmatmul.msk.f32.gmra.mxu3 %vm90_vm0, %v1849_v19  ;;  %202 = vmatpush.msra.mxu0 %v67_v5 }
  0x23   :  { %1532 = vmatmul.msk.f32.gmra.mxu1 %vm90_vm0, %v1849_v19  ;;  %309 = vmatpush.msrb.mxu3 %v219_v43  ;;  %v221_v43 = vld [vmem:[%s2532_s4 + $0x48] sm:$0xff] }
  0x24   :  { %1542 = vmatmul.msk.f32.gmra.mxu2 %vm90_vm0, %v1849_v19  ;;  %203 = vmatpush.msra.mxu0 %v62_v7 }
  0x25   :  { %310 = vmatpush.msrb.mxu3 %v214_v44  ;;  %505 = vmatpush.msrb.mxu2 %v383_v52  ;;  %v216_v44 = vld [vmem:[%s2532_s4 + $0x20] sm:$0xff] }
  0x26   :  { %204 = vmatpush.msra.mxu0 %v57_v8  ;;  %352 = vmatpush.msrb.mxu1 %v236_v39  ;;  %v665_v39 = vld [vmem:[%s2536_s8 + $0x70] sm:$0xff] }
  0x27   :  { %435 = vmatpush.msra.mxu3 %v385_v45  ;;  %506 = vmatpush.msrb.mxu2 %v378_v55  ;;  %v387_v45 = vld [vmem:[%s2534_s6 + $0xb8] sm:$0xff] }
  0x28   :  { %1537 = vmatmul.msk.f32.vlgmr.msra.gmra.mxu0 %vm90_vm0, %v1819_v10  ;;  %353 = vmatpush.msrb.mxu1 %v231_v40 }
  0x29   :  { %436 = vmatpush.msra.mxu3 %v380_v46  ;;  %507 = vmatpush.msrb.mxu2 %v373_v56  ;;  %v382_v46 = vld [vmem:[%s2534_s6 + $0x90] sm:$0xff] }
  0x2a   :  { %1543 = vmatmul.msk.f32.vlgmr.msrb.gmra.mxu3 %vm90_vm0, %v1819_v10  ;;  %329 = vmatpush.msrb.mxu0 %v235_v11 }
  0x2b   :  { %1539 = vmatmul.msk.f32.vlgmr.msra.gmra.mxu1 %vm90_vm0, %v1819_v10  ;;  %437 = vmatpush.msra.mxu3 %v375_v47 }
  0x2c   :  { %1549 = vmatmul.msk.f32.vlgmr.msra.gmra.mxu2 %vm90_vm0, %v1819_v10  ;;  %330 = vmatpush.msrb.mxu0 %v230_v15 }
  0x2d   :  { %438 = vmatpush.msra.mxu3 %v370_v48  ;;  %508 = vmatpush.msrb.mxu2 %v368_v60  ;;  %v241_v48 = vperm.slane %v2019_v6, 2  ;;  %v372_v60 = vld [vmem:[%s2534_s6 + $0x40] sm:$0xff] }
  0x2e   :  { %331 = vmatpush.msrb.mxu0 %v225_v18  ;;  %354 = vmatpush.msrb.mxu1 %v226_v41  ;;  %v664_v41 = vld [vmem:[%s2536_s8 + $0x68] sm:$0xff] }
  0x2f   :  { %439 = vmatpush.msra.mxu3 %v365_v49 }
  0x30   :  { %1538 = vmatmul.msk.f32.gmra.mxu0 %vm90_vm0, %v1849_v19  ;;  %355 = vmatpush.msrb.mxu1 %v221_v43 }
  0x31   :  { %332 = vmatpush.msrb.mxu0 %v220_v31 }
  0x32   :  { %1544 = vmatmul.msk.f32.gmra.mxu3 %vm90_vm0, %v1849_v19  ;;  %356 = vmatpush.msrb.mxu1 %v216_v44 }
  0x33   :  { %1540 = vmatmul.msk.f32.gmra.mxu1 %vm90_vm0, %v1849_v19  ;;  %333 = vmatpush.msrb.mxu0 %v215_v32 }
  0x34   :  { %1550 = vmatmul.msk.f32.gmra.mxu2 %vm90_vm0, %v1849_v19  ;;  %481 = vmatpush.msra.mxu1 %v387_v45 }
  0x35   :  { %458 = vmatpush.msra.mxu0 %v386_v33 }
  0x36   :  { %482 = vmatpush.msra.mxu1 %v382_v46 }
  0x37   :  { %459 = vmatpush.msra.mxu0 %v381_v34 }
  0x38   :  { %1545 = vmatmul.msk.f32.vlgmr.msrb.gmra.mxu0 %vm90_vm0, %v1819_v10 }
  0x39   :  { %460 = vmatpush.msra.mxu0 %v376_v35 }
  0x3a   :  { %1551 = vmatmul.msk.f32.vlgmr.msra.gmra.mxu3 %vm90_vm0, %v1819_v10 }
  0x3b   :  { %461 = vmatpush.msra.mxu0 %v371_v37  ;;  %1547 = vmatmul.msk.f32.vlgmr.msrb.gmra.mxu1 %vm90_vm0, %v1819_v10 }
  0x3c   :  { %1557 = vmatmul.msk.f32.vlgmr.msrb.gmra.mxu2 %vm90_vm0, %v1819_v10 }
  0x3d   :  { %462 = vmatpush.msra.mxu0 %v366_v38  ;;  %v666_v38 = vld [vmem:[%s2536_s8 + $0x78] sm:$0xff] }
  0x40   :  { %1546 = vmatmul.msk.f32.gmra.mxu0 %vm90_vm0, %v1849_v19 }
  0x42   :  { %1552 = vmatmul.msk.f32.gmra.mxu3 %vm90_vm0, %v1849_v19 }
  0x43   :  { %1548 = vmatmul.msk.f32.gmra.mxu1 %vm90_vm0, %v1849_v19 }
  0x44   :  { %1558 = vmatmul.msk.f32.gmra.mxu2 %vm90_vm0, %v1849_v19 }
  0x48   :  { %1553 = vmatmul.msk.f32.vlgmr.msra.gmra.mxu0 %vm90_vm0, %v1819_v10 }
  0x50   :  { %1554 = vmatmul.msk.f32.gmra.mxu0 %vm90_vm0, %v1849_v19 }
  0x88   :  { %v114_v50 = vpop.f32.mrf.mxu1 }
  0x89   :  { %v115_v20 = vadd.f32 %v114_v50, %v80_v12 }
  0x8f   :  { %v160_v58 = vpop.f32.mrf.mxu2 }
  0x90   :  { %v117_v57 = vpop.f32.mrf.mxu1  ;;  %v1993_v59 = vadd.f32 %v160_v58, %v82_v54 }
  0x91   :  { %v118_v29 = vadd.f32 %v117_v57, %v80_v12  ;;  %v377_v57 = vld [vmem:[%s2534_s6 + $0x68] sm:$0xff] }
  0x92   :  { %483 = vmatpush.msra.mxu1 %v377_v57 }
  0x94   :  { %484 = vmatpush.msra.mxu1 %v372_v60 }
  0x96   :  { %485 = vmatpush.msra.mxu1 %v367_v2  ;;  %v1577_v2 = vld [vmem:[%s2536_s8 + $0xf0] sm:$0xff] }
  0x97   :  { %v2001_v63 = vpop.f32.mrf.mxu2  ;;  %1555 = vmatmul.msk.f32.vlgmr.msra.gmra.mxu1 %vm90_vm0, %v1819_v10 }
  0x98   :  { %v137_v62 = vpop.f32.mrf.mxu1 }
  0x99   :  { %v2003_v0 = vadd.f32 %v137_v62, %v81_v61 }
  0x9d   :  { %v2068_v36 = vpop.f32.mrf.mxu3 }
  0x9f   :  { %v289_v4 = vpop.f32.mrf.mxu2  ;;  %1556 = vmatmul.msk.f32.gmra.mxu1 %vm90_vm0, %v1849_v19 }
  0xa0   :  { %v140_v3 = vpop.f32.mrf.mxu1  ;;  %v290_v23 = vadd.f32 %v289_v4, %v240_v21 }
  0xa1   :  { %v141_v30 = vadd.f32 %v140_v3, %v81_v61 }
  0xa5   :  { %v2089_v42 = vpop.f32.mrf.mxu3 }
  0xa7   :  { %v292_v14 = vpop.f32.mrf.mxu2 }
  0xa8   :  { %v266_v13 = vpop.f32.mrf.mxu1  ;;  %v293_v24 = vadd.f32 %v292_v14, %v240_v21 }
  0xa9   :  { %v267_v16 = vadd.f32 %v266_v13, %v239_v9 }
  0xab   :  { %531 = vmatpush.xpose.msrb.mxu3 %v267_v16 }
  0xad   :  { %v312_v47 = vpop.f32.mrf.mxu3 }
  0xae   :  { %532 = vmatmul.f32.vlgmr.msrb.gmra.mxu3 %v115_v20  ;;  %v313_v52 = vadd.f32 %v312_v47, %v241_v48 }
  0xaf   :  { %v418_v26 = vpop.f32.mrf.mxu2 }
  0xb0   :  { %v269_v25 = vpop.f32.mrf.mxu1  ;;  %v419_v28 = vadd.f32 %v418_v26, %v391_v22 }
  0xb1   :  { %v270_v27 = vadd.f32 %v269_v25, %v239_v9 }
  0xb2   :  { %623 = vmatpush.msra.mxu2 %v419_v28 }
  0xb3   :  { %551 = vmatpush.xpose.msra.mxu3 %v270_v27 }
  0xb4   :  { %682 = vmatpush.xpose.msrb.mxu2 %v290_v23 }
  0xb5   :  { %v315_v49 = vpop.f32.mrf.mxu3 }
  0xb6   :  { %552 = vmatmul.f32.vlgmr.msra.gmra.mxu3 %v118_v29  ;;  %v2110_v50 = vadd.f32 %v315_v49, %v241_v48  ;;  %v663_v48 = vld [vmem:[%s2536_s8 + $0x60] sm:$0xff] }
  0xb7   :  { %702 = vmatpush.xpose.msrb.mxu3 %v293_v24  ;;  %v421_v61 = vpop.f32.mrf.mxu2 }
  0xb8   :  { %v422_v1 = vadd.f32 %v421_v61, %v391_v22  ;;  %v2140_v37 = vpop.f32.mrf.mxu1 }
  0xba   :  { %646 = vmatpush.msrb.mxu1 %v422_v1  ;;  %v661_v1 = vld [vmem:[%s2536_s8 + $0x50] sm:$0xff] }
  0xbb   :  { %841 = vmatpush.msra.mxu3 %v666_v38  ;;  %v1571_v38 = vld [vmem:[%s2536_s8 + $0xc0] sm:$0xff] }
  0xbd   :  { %v441_v55 = vpop.f32.mrf.mxu3  ;;  %842 = vmatpush.msra.mxu3 %v665_v39 }
  0xbe   :  { %703 = vmatmul.f32.vlgmr.msrb.gmra.mxu3 %v141_v30  ;;  %v442_v56 = vadd.f32 %v441_v55, %v392_v51  ;;  %v662_v55 = vld [vmem:[%s2536_s8 + $0x58] sm:$0xff] }
  0xbf   :  { %843 = vmatpush.msra.mxu3 %v664_v41  ;;  %v1570_v41 = vld [vmem:[%s2536_s8 + $0xb8] sm:$0xff] }
  0xc0   :  { %773 = vmatpush.msrb.mxu0 %v442_v56  ;;  %v1578_v56 = vld [vmem:[%s2536_s8 + $0xf8] sm:$0xff] }
  0xc1   :  { %844 = vmatpush.msra.mxu3 %v663_v48  ;;  %v1566_v48 = vld [vmem:[%s2536_s8 + $0x98] sm:$0xff] }
  0xc2   :  { %879 = vmatpush.xpose.msra.mxu0 %v313_v52 }
  0xc3   :  { %845 = vmatpush.msra.mxu3 %v662_v55  ;;  %v651_v55 = vld [vmem:[%s2536_s8] sm:$0xff] }
  0xc5   :  { %v444_v58 = vpop.f32.mrf.mxu3  ;;  %846 = vmatpush.msra.mxu3 %v661_v1 }
  0xc6   :  { %v445_v62 = vadd.f32 %v444_v58, %v392_v51  ;;  %v243_v58 = vperm.slane %v2019_v6, 4 }
  0xc8   :  { %796 = vmatpush.msra.mxu1 %v445_v62  ;;  %v361_v62 = vpop.f32.mrf.mxu1 }
 0x131   :  { %v533_v3 = vpop.f32.mrf.mxu3 }
 0x132   :  { %v557_v4 = vsel %vm556_vm1, %v533_v3, -inf }
 0x133   :  { %558 = vmax.xlane.f32.xlu2 %v557_v4 }
 0x139   :  { %v553_v5 = vpop.f32.mrf.mxu3 }
 0x13a   :  { %v560_v7 = vsel %vm556_vm1, %v553_v5, -inf }
 0x13b   :  { %561 = vmax.xlane.f32.xlu0 %v560_v7  ;;  %v1576_v7 = vld [vmem:[%s2536_s8 + $0xe8] sm:$0xff] }
 0x141   :  { %v704_v8 = vpop.f32.mrf.mxu3 }
 0x142   :  { %v710_v9 = vsel %vm556_vm1, %v704_v8, -inf }
 0x143   :  { %711 = vmax.xlane.f32.xlu0 %v710_v9 }
 0x1a6   :  { %v559_v11 = vpop.xlane.xlu2 %558 }
 0x1a7   :  { %v563_v12 = vsub.f32 %v533_v3, %v559_v11  ;;  %v2173_v3 = vadd.f32 %v361_v62, %v243_v58 }
 0x1a9   :  { %v565_v13 = vmul.f32 1.442695, %v563_v12 }
 0x1ab   :  { %1640 = vpow2.f32 %v565_v13  ;;  %v659_v13 = vld [vmem:[%s2536_s8 + $0x40] sm:$0xff] }
 0x1ae   :  { %v562_v14 = vpop.xlane.xlu0 %561 }
 0x1af   :  { %v564_v15 = vsub.f32 %v553_v5, %v562_v14  ;;  %v660_v5 = vld [vmem:[%s2536_s8 + $0x48] sm:$0xff]  ;;  %v1575_v14 = vld [vmem:[%s2536_s8 + $0xe0] sm:$0xff] }
 0x1b0   :  { %847 = vmatpush.msra.mxu3 %v660_v5 }
 0x1b1   :  { %v1641_v16 = vpop.eup %1640  ;;  %v567_v18 = vmul.f32 1.442695, %v564_v15 }
 0x1b2   :  { %v569_v20 = vsel %vm556_vm1, %v1641_v16, 0.0  ;;  %848 = vmatpush.msra.mxu3 %v659_v13 }
 0x1b3   :  { %1642 = vpow2.f32 %v567_v18  ;;  %570 = vadd.xlane.f32.xlu2 %v569_v20 }
 0x1b6   :  { %v712_v21 = vpop.xlane.xlu0 %711 }
 0x1b7   :  { %v714_v22 = vsub.f32 %v704_v8, %v712_v21  ;;  %v658_v21 = vld [vmem:[%s2536_s8 + $0x38] sm:$0xff] }
 0x1b8   :  { %849 = vmatpush.msra.mxu3 %v658_v21 }
 0x1b9   :  { %v2132_v23 = vpop.eup %1642  ;;  %v717_v24 = vmul.f32 1.442695, %v714_v22 }
 0x1ba   :  { %v572_v25 = vsel %vm556_vm1, %v2132_v23, 0.0 }
 0x1bb   :  { %1644 = vpow2.f32 %v717_v24  ;;  %573 = vadd.xlane.f32.xlu1 %v572_v25  ;;  %v1574_v24 = vld [vmem:[%s2536_s8 + $0xd8] sm:$0xff] }
 0x1c1   :  { %v2136_v26 = vpop.eup %1644 }
 0x1c2   :  { %v722_v27 = vsel %vm556_vm1, %v2136_v26, 0.0 }
 0x1c3   :  { %723 = vadd.xlane.f32.xlu1 %v722_v27 }
 0x226   :  { %v571_v28 = vpop.xlane.xlu2 %570 }
 0x227   :  { %1646 = vrcp.f32 %v571_v28  ;;  %v586_v33 = vand.u32 2147483648, %v571_v28  ;;  %v584_v35 = vand.u32 2147483647, %v571_v28  ;;  %vm580_vm3 = vweird.f32 %v571_v28 }
 0x229   :  { %v587_v44 = vor.u32 1.1754944e-38, %v586_v33  ;;  %vm585_vm5 = vcmp.eq.f32.partialorder %v584_v35, 8.507059e+37 }
 0x22d   :  { %v1647_v29 = vpop.eup %1646 }
 0x22e   :  { %v576_v30 = vmul.f32 %v1647_v29, %v571_v28  ;;  %v574_v31 = vpop.xlane.xlu1 %573  ;;  %vm581_vm2 = vweird.f32 %v1647_v29  ;;  %v657_v28 = vld [vmem:[%s2536_s8 + $0x30] sm:$0xff] }
 0x22f   :  { %1648 = vrcp.f32 %v574_v31  ;;  %vm582_vm4 = vmor %vm580_vm3, %vm581_vm2  ;;  %v601_v57 = vand.u32 2147483648, %v574_v31  ;;  %v599_v61 = vand.u32 2147483647, %v574_v31  ;;  %vm595_vm7 = vweird.f32 %v574_v31  ;;  %850 = vmatpush.msra.mxu3 %v657_v28 }
 0x230   :  { %v577_v32 = vsub.f32 1.0, %v576_v30  ;;  %v1573_v30 = vld [vmem:[%s2536_s8 + $0xd0] sm:$0xff] }
 0x231   :  { %v602_v9 = vor.u32 1.1754944e-38, %v601_v57  ;;  %vm600_vm9 = vcmp.eq.f32.partialorder %v599_v61, 8.507059e+37 }
 0x232   :  { %v578_v34 = vmul.f32 %v1647_v29, %v577_v32 }
 0x234   :  { %v579_v40 = vadd.f32 %v1647_v29, %v578_v34  ;;  %v655_v34 = vld [vmem:[%s2536_s8 + $0x20] sm:$0xff] }
 0x235   :  { %v1649_v43 = vpop.eup %1648 }
 0x236   :  { %v583_v45 = vsel %vm582_vm4, %v1647_v29, %v579_v40  ;;  %v591_v46 = vmul.f32 %v1649_v43, %v574_v31  ;;  %v2151_v47 = vpop.xlane.xlu1 %723  ;;  %vm596_vm6 = vweird.f32 %v1649_v43  ;;  %v654_v40 = vld [vmem:[%s2536_s8 + $0x18] sm:$0xff] }
 0x237   :  { %v588_v49 = vsel %vm585_vm5, %v587_v44, %v583_v45  ;;  %1650 = vrcp.f32 %v2151_v47  ;;  %vm597_vm8 = vmor %vm595_vm7, %vm596_vm6  ;;  %v751_v22 = vand.u32 2147483648, %v2151_v47  ;;  %v749_v27 = vand.u32 2147483647, %v2151_v47  ;;  %v652_v44 = vld [vmem:[%s2536_s8 + $0x8] sm:$0xff] }
 0x238   :  { %v592_v51 = vsub.f32 1.0, %v591_v46  ;;  %v589_v52 = vmul.f32 %v1641_v16, %v588_v49  ;;  %v394_v16 = vperm.slane %v2040_v17, 3  ;;  %vm745_vm11 = vweird.f32 %v2151_v47  ;;  %v1568_v45 = vld [vmem:[%s2536_s8 + $0xa8] sm:$0xff] }
 0x239   :  { %v752_v32 = vor.u32 1.1754944e-38, %v751_v22  ;;  %vm750_vm13 = vcmp.eq.f32.partialorder %v749_v27, 8.507059e+37  ;;  %v164_v46 = vadd.f32 %v2001_v63, %v82_v54  ;;  %v1564_v54 = vld [vmem:[%s2536_s8 + $0x88] sm:$0xff]  ;;  %v1563_v63 = vld [vmem:[%s2536_s8 + $0x80] sm:$0xff]  ;;  %v242_v27 = vperm.slane %v2019_v6, 3 }
 0x23a   :  { %v593_v60 = vmul.f32 %v1649_v43, %v592_v51  ;;  %1559 = vmatmul.msk.f32.vlgmr.msra.gmra.mxu2 %vm556_vm1, %v589_v52  ;;  %v1565_v51 = vld [vmem:[%s2536_s8 + $0x90] sm:$0xff] }
 0x23b   :  { %818 = vmatpush.msra.mxu2 %v1578_v56  ;;  %v2263_v56 = vpop.f32.mrf.mxu2 }
 0x23c   :  { %v594_v4 = vadd.f32 %v1649_v43, %v593_v60 }
 0x23d   :  { %v1651_v8 = vpop.eup %1650  ;;  %819 = vmatpush.msra.mxu2 %v1577_v2 }
 0x23e   :  { %v598_v11 = vsel %vm597_vm8, %v1649_v43, %v594_v4  ;;  %v741_v12 = vmul.f32 %v1651_v8, %v2151_v47  ;;  %vm746_vm10 = vweird.f32 %v1651_v8  ;;  %v653_v43 = vld [vmem:[%s2536_s8 + $0x10] sm:$0xff]  ;;  %v1567_v47 = vld [vmem:[%s2536_s8 + $0xa0] sm:$0xff] }
 0x23f   :  { %v603_v15 = vsel %vm600_vm9, %v602_v9, %v598_v11  ;;  %820 = vmatpush.msra.mxu2 %v1576_v7  ;;  %vm747_vm12 = vmor %vm745_vm11, %vm746_vm10 }
 0x240   :  { %v742_v18 = vsub.f32 1.0, %v741_v12  ;;  %v604_v20 = vmul.f32 %v2132_v23, %v603_v15  ;;  %v487_v23 = vpop.f32.mrf.mxu1 }
 0x241   :  { %821 = vmatpush.msra.mxu2 %v1575_v14  ;;  %v2204_v29 = vadd.f32 %v487_v23, %v394_v16  ;;  %v393_v23 = vperm.slane %v2040_v17, 2 }
 0x242   :  { %v743_v25 = vmul.f32 %v1651_v8, %v742_v18  ;;  %1560 = vmatmul.msk.f32.vlgmr.msrb.gmra.mxu1 %vm556_vm1, %v604_v20  ;;  %683 = vmatmul.f32.vlgmr.msrb.gmra.mxu2 %v2003_v0  ;;  %v656_v0 = vld [vmem:[%s2536_s8 + $0x28] sm:$0xff]  ;;  %v2273_v20 = vpop.f32.mrf.mxu0 }
 0x243   :  { %899 = vmatpush.xpose.msrb.mxu1 %v2110_v50  ;;  %822 = vmatpush.msra.mxu2 %v1574_v24  ;;  %v1572_v50 = vld [vmem:[%s2536_s8 + $0xc8] sm:$0xff]  ;;  %v2265_v57 = vpop.f32.mrf.mxu2 }
 0x244   :  { %v744_v31 = vadd.f32 %v1651_v8, %v743_v25  ;;  %851 = vmatpush.msra.mxu3 %v656_v0 }
 0x245   :  { %823 = vmatpush.msra.mxu2 %v1573_v30 }
 0x246   :  { %v748_v33 = vsel %vm747_vm12, %v1651_v8, %v744_v31  ;;  %852 = vmatpush.msra.mxu3 %v655_v34 }
 0x247   :  { %v753_v35 = vsel %vm750_vm13, %v752_v32, %v748_v33  ;;  %824 = vmatpush.msra.mxu2 %v1572_v50 }
 0x248   :  { %v754_v39 = vmul.f32 %v2136_v26, %v753_v35  ;;  %853 = vmatpush.msra.mxu3 %v654_v40  ;;  %v1569_v26 = vld [vmem:[%s2536_s8 + $0xb0] sm:$0xff]  ;;  %v490_v49 = vpop.f32.mrf.mxu1 }
 0x249   :  { %825 = vmatpush.msra.mxu2 %v1571_v38  ;;  %v491_v52 = vadd.f32 %v490_v49, %v394_v16 }
 0x24a   :  { %1562 = vmatmul.msk.f32.vlgmr.msra.gmra.mxu1 %vm556_vm1, %v754_v39  ;;  %854 = vmatpush.msra.mxu3 %v653_v43  ;;  %v2275_v21 = vpop.f32.mrf.mxu0 }
 0x24b   :  { %826 = vmatpush.msra.mxu2 %v1570_v41 }
 0x24c   :  { %855 = vmatpush.msra.mxu3 %v652_v44 }
 0x24d   :  { %827 = vmatpush.msra.mxu2 %v1569_v26 }
 0x24e   :  { %856 = vmatpush.msra.mxu3 %v651_v55 }
 0x24f   :  { %828 = vmatpush.msra.mxu2 %v1568_v45 }
 0x251   :  { %829 = vmatpush.msra.mxu2 %v1567_v47 }
 0x252   :  { %900 = vmatmul.f32.vlgmr.msrb.gmra.mxu1 %v164_v46  ;;  %v335_v22 = vpop.f32.mrf.mxu0 }
 0x253   :  { %830 = vmatpush.msra.mxu2 %v1566_v48  ;;  %v336_v28 = vadd.f32 %v335_v22, %v242_v27 }
 0x255   :  { %831 = vmatpush.msra.mxu2 %v1565_v51 }
 0x257   :  { %832 = vmatpush.msra.mxu2 %v1564_v54 }
 0x259   :  { %833 = vmatpush.msra.mxu2 %v1563_v63 }
 0x25a   :  { %v338_v24 = vpop.f32.mrf.mxu0 }
 0x25b   :  { %1169 = vmatpush.msrb.mxu2 %v491_v52 }
 0x262   :  { %v464_v25 = vpop.f32.mrf.mxu0 }
 0x263   :  { %v465_v44 = vadd.f32 %v464_v25, %v393_v23 }
 0x26a   :  { %v467_v30 = vpop.f32.mrf.mxu0 }
 0x26b   :  { %v468_v31 = vadd.f32 %v467_v30, %v393_v23  ;;  %v1614_v30 = vld [vmem:[%s2536_s8 + $0x1f8] sm:$0xff] }
 0x26c   :  { %1191 = vmatpush.msrb.mxu3 %v1614_v30 }
 0x26d   :  { %993 = vmatpush.msra.mxu1 %v468_v31  ;;  %v1613_v31 = vld [vmem:[%s2536_s8 + $0x1f0] sm:$0xff] }
 0x26e   :  { %1192 = vmatpush.msrb.mxu3 %v1613_v31 }
 0x26f   :  { %1055 = vmatpush.xpose.msrb.mxu1 %v336_v28 }
 0x2bd   :  { %v625_v60 = vpop.f32.mrf.mxu2 }
 0x2be   :  { %857 = vmatmul.f32.vlgmr.msra.gmra.mxu3 %v625_v60 }
 0x2bf   :  { %v648_v61 = vpop.f32.mrf.mxu1 }
 0x2c5   :  { %v684_v62 = vpop.f32.mrf.mxu2 }
 0x2c6   :  { %860 = vmatmul.f32.gmra.mxu3 %v648_v61  ;;  %v707_v1 = vsel %vm556_vm1, %v684_v62, -inf }
 0x2c7   :  { %708 = vmax.xlane.f32.xlu2 %v707_v1  ;;  %v2268_v2 = vpop.f32.mrf.mxu1  ;;  %v83_v1 = vperm.slane %v1982_v53, 3 }
 0x2cf   :  { %v901_v4 = vpop.f32.mrf.mxu1 }
 0x2d0   :  { %v907_v5 = vsel %vm556_vm1, %v901_v4, -inf }
 0x2d1   :  { %908 = vmax.xlane.f32.xlu0 %v907_v5  ;;  %v187_v5 = vadd.f32 %v2089_v42, %v83_v1 }
 0x33a   :  { %v709_v7 = vpop.xlane.xlu2 %708 }
 0x33b   :  { %v713_v8 = vsub.f32 %v684_v62, %v709_v7  ;;  %v339_v62 = vadd.f32 %v338_v24, %v242_v27  ;;  %v359_v7 = vadd.f32 %v2140_v37, %v243_v58 }
 0x33d   :  { %v715_v9 = vmul.f32 1.442695, %v713_v8 }
 0x33f   :  { %1652 = vpow2.f32 %v715_v9 }
 0x344   :  { %v909_v11 = vpop.xlane.xlu0 %908 }
 0x345   :  { %v1653_v12 = vpop.eup %1652  ;;  %v911_v13 = vsub.f32 %v901_v4, %v909_v11  ;;  %v184_v4 = vadd.f32 %v2068_v36, %v83_v1 }
 0x346   :  { %v719_v14 = vsel %vm556_vm1, %v1653_v12, 0.0 }
 0x347   :  { %v914_v15 = vmul.f32 1.442695, %v911_v13  ;;  %720 = vadd.xlane.f32.xlu0 %v719_v14 }
 0x349   :  { %1654 = vpow2.f32 %v914_v15 }
 0x34f   :  { %v1655_v16 = vpop.eup %1654 }
 0x350   :  { %v919_v18 = vsel %vm556_vm1, %v1655_v16, 0.0 }
 0x351   :  { %920 = vadd.xlane.f32.xlu1 %v919_v18 }
 0x3ba   :  { %v721_v0 = vpop.xlane.xlu0 %720 }
 0x3bb   :  { %1656 = vrcp.f32 %v721_v0  ;;  %v736_v35 = vand.u32 2147483648, %v721_v0  ;;  %v734_v39 = vand.u32 2147483647, %v721_v0  ;;  %vm730_vm15 = vweird.f32 %v721_v0 }
 0x3bd   :  { %v737_v41 = vor.u32 1.1754944e-38, %v736_v35  ;;  %vm735_vm3 = vcmp.eq.f32.partialorder %v734_v39, 8.507059e+37  ;;  %v1611_v39 = vld [vmem:[%s2536_s8 + $0x1e0] sm:$0xff] }
 0x3c1   :  { %v1657_v32 = vpop.eup %1656 }
 0x3c2   :  { %v726_v50 = vmul.f32 %v1657_v32, %v721_v0  ;;  %vm731_vm14 = vweird.f32 %v1657_v32  ;;  %v1596_v0 = vld [vmem:[%s2536_s8 + $0x178] sm:$0xff] }
 0x3c3   :  { %vm732_vm2 = vmor %vm730_vm15, %vm731_vm14 }
 0x3c4   :  { %v727_v33 = vsub.f32 1.0, %v726_v50  ;;  %v921_v34 = vpop.xlane.xlu1 %920  ;;  %v1595_v50 = vld [vmem:[%s2536_s8 + $0x170] sm:$0xff] }
 0x3c5   :  { %1658 = vrcp.f32 %v921_v34  ;;  %v948_v49 = vand.u32 2147483648, %v921_v34  ;;  %v946_v52 = vand.u32 2147483647, %v921_v34  ;;  %vm942_vm5 = vweird.f32 %v921_v34 }
 0x3c6   :  { %v728_v38 = vmul.f32 %v1657_v32, %v727_v33 }
 0x3c7   :  { %v949_v63 = vor.u32 1.1754944e-38, %v948_v49  ;;  %vm947_vm7 = vcmp.eq.f32.partialorder %v946_v52, 8.507059e+37  ;;  %v1591_v49 = vld [vmem:[%s2536_s8 + $0x150] sm:$0xff]  ;;  %v1608_v52 = vld [vmem:[%s2536_s8 + $0x1c8] sm:$0xff] }
 0x3c8   :  { %v729_v40 = vadd.f32 %v1657_v32, %v728_v38 }
 0x3ca   :  { %v733_v43 = vsel %vm732_vm2, %v1657_v32, %v729_v40  ;;  %v1612_v32 = vld [vmem:[%s2536_s8 + $0x1e8] sm:$0xff] }
 0x3cb   :  { %v1659_v26 = vpop.eup %1658  ;;  %v738_v45 = vsel %vm735_vm3, %v737_v41, %v733_v43  ;;  %1193 = vmatpush.msrb.mxu3 %v1612_v32  ;;  %v1593_v41 = vld [vmem:[%s2536_s8 + $0x160] sm:$0xff] }
 0x3cc   :  { %v938_v46 = vmul.f32 %v1659_v26, %v921_v34  ;;  %v739_v47 = vmul.f32 %v1653_v12, %v738_v45  ;;  %vm943_vm4 = vweird.f32 %v1659_v26  ;;  %v1594_v34 = vld [vmem:[%s2536_s8 + $0x168] sm:$0xff]  ;;  %v1592_v45 = vld [vmem:[%s2536_s8 + $0x158] sm:$0xff] }
 0x3cd   :  { %vm944_vm6 = vmor %vm942_vm5, %vm943_vm4  ;;  %1194 = vmatpush.msrb.mxu3 %v1611_v39  ;;  %v1584_v39 = vld [vmem:[%s2536_s8 + $0x118] sm:$0xff] }
 0x3ce   :  { %v939_v48 = vsub.f32 1.0, %v938_v46  ;;  %1561 = vmatmul.msk.f32.vlgmr.msrb.gmra.mxu0 %vm556_vm1, %v739_v47 }
 0x3cf   :  { %970 = vmatpush.msrb.mxu0 %v465_v44 }
 0x3d0   :  { %v940_v51 = vmul.f32 %v1659_v26, %v939_v48  ;;  %v1609_v48 = vld [vmem:[%s2536_s8 + $0x1d0] sm:$0xff] }
 0x3d2   :  { %v941_v54 = vadd.f32 %v1659_v26, %v940_v51 }
 0x3d4   :  { %v945_v55 = vsel %vm944_vm6, %v1659_v26, %v941_v54  ;;  %v1610_v26 = vld [vmem:[%s2536_s8 + $0x1d8] sm:$0xff] }
 0x3d5   :  { %v950_v60 = vsel %vm947_vm7, %v949_v63, %v945_v55  ;;  %1195 = vmatpush.msrb.mxu3 %v1610_v26  ;;  %v395_v63 = vperm.slane %v2040_v17, 4 }
 0x3d6   :  { %880 = vmatmul.f32.vlgmr.msra.gmra.mxu0 %v1993_v59  ;;  %v951_v61 = vmul.f32 %v1655_v16, %v950_v60  ;;  %v1590_v60 = vld [vmem:[%s2536_s8 + $0x148] sm:$0xff] }
 0x3d7   :  { %1015 = vmatpush.msra.mxu0 %v1596_v0  ;;  %1196 = vmatpush.msrb.mxu3 %v1609_v48 }
 0x3d8   :  { %1580 = vmatmul.msk.f32.vlgmr.msra.gmra.mxu1 %vm556_vm1, %v951_v61 }
 0x3d9   :  { %1075 = vmatpush.xpose.msra.mxu1 %v339_v62  ;;  %1016 = vmatpush.msra.mxu0 %v1595_v50 }
 0x3da   :  { %1197 = vmatpush.msrb.mxu3 %v1608_v52 }
 0x3db   :  { %1017 = vmatpush.msra.mxu0 %v1594_v34 }
 0x3dd   :  { %1018 = vmatpush.msra.mxu0 %v1593_v41  ;;  %v1581_v41 = vld [vmem:[%s2536_s8 + $0x100] sm:$0xff] }
 0x3df   :  { %1019 = vmatpush.msra.mxu0 %v1592_v45 }
 0x3e0   :  { %1056 = vmatmul.f32.vlgmr.msrb.gmra.mxu1 %v184_v4  ;;  %v1607_v4 = vld [vmem:[%s2536_s8 + $0x1c0] sm:$0xff] }
 0x3e1   :  { %1146 = vmatpush.msrb.mxu1 %v2204_v29  ;;  %1020 = vmatpush.msra.mxu0 %v1591_v49 }
 0x3e2   :  { %1198 = vmatpush.msrb.mxu3 %v1607_v4 }
 0x3e3   :  { %1021 = vmatpush.msra.mxu0 %v1590_v60 }
 0x3e8   :  { %1076 = vmatmul.f32.vlgmr.msra.gmra.mxu1 %v187_v5 }
 0x3e9   :  { %1231 = vmatpush.xpose.msra.mxu1 %v359_v7  ;;  %v1589_v7 = vld [vmem:[%s2536_s8 + $0x140] sm:$0xff] }
 0x3ea   :  { %1022 = vmatpush.msra.mxu0 %v1589_v7  ;;  %v1631_v7 = vld [vmem:[%s2536_s8 + $0x270] sm:$0xff] }
 0x44b   :  { %v775_v59 = vpop.f32.mrf.mxu0 }
 0x44c   :  { %834 = vmatmul.f32.vlgmr.msra.gmra.mxu2 %v775_v59 }
 0x44d   :  { %1251 = vmatpush.xpose.msra.mxu2 %v2173_v3 }
 0x453   :  { %v881_v29 = vpop.f32.mrf.mxu0 }
 0x454   :  { %837 = vmatmul.f32.gmra.mxu2 %v2268_v2  ;;  %v904_v37 = vsel %vm556_vm1, %v881_v29, -inf }
 0x455   :  { %v2291_v8 = vpop.f32.mrf.mxu1 }
 0x45d   :  { %v1057_v36 = vpop.f32.mrf.mxu1 }
 0x45e   :  { %v1080_v9 = vsel %vm556_vm1, %v1057_v36, -inf }
 0x45f   :  { %1081 = vmax.xlane.f32.xlu2 %v1080_v9  ;;  %v1606_v9 = vld [vmem:[%s2536_s8 + $0x1b8] sm:$0xff] }
 0x460   :  { %1199 = vmatpush.msrb.mxu3 %v1606_v9 }
 0x465   :  { %v1077_v42 = vpop.f32.mrf.mxu1 }
 0x466   :  { %v1083_v6 = vsel %vm556_vm1, %v1077_v42, -inf }
 0x467   :  { %1084 = vmax.xlane.f32.xlu1 %v1083_v6  ;;  %905 = vmax.xlane.f32.xlu2 %v904_v37  ;;  %v1588_v37 = vld [vmem:[%s2536_s8 + $0x138] sm:$0xff] }
 0x468   :  { %1023 = vmatpush.msra.mxu0 %v1588_v37  ;;  %v1627_v37 = vld [vmem:[%s2536_s8 + $0x250] sm:$0xff] }
 0x4d2   :  { %v1082_v58 = vpop.xlane.xlu2 %1081 }
 0x4d3   :  { %v1086_v11 = vsub.f32 %v1057_v36, %v1082_v58 }
 0x4d5   :  { %v1088_v12 = vmul.f32 1.442695, %v1086_v11 }
 0x4d7   :  { %1660 = vpow2.f32 %v1088_v12 }
 0x4da   :  { %v1085_v3 = vpop.xlane.xlu1 %1084  ;;  %v906_v2 = vpop.xlane.xlu2 %905 }
 0x4db   :  { %v1087_v13 = vsub.f32 %v1077_v42, %v1085_v3  ;;  %v910_v14 = vsub.f32 %v881_v29, %v906_v2  ;;  %v511_v29 = vadd.f32 %v2263_v56, %v395_v63  ;;  %v1605_v56 = vld [vmem:[%s2536_s8 + $0x1b0] sm:$0xff] }
 0x4dc   :  { %1200 = vmatpush.msrb.mxu3 %v1605_v56  ;;  %v1626_v56 = vld [vmem:[%s2536_s8 + $0x248] sm:$0xff] }
 0x4dd   :  { %v2296_v15 = vpop.eup %1660  ;;  %v1090_v16 = vmul.f32 1.442695, %v1087_v13  ;;  %v912_v18 = vmul.f32 1.442695, %v910_v14  ;;  %v1587_v13 = vld [vmem:[%s2536_s8 + $0x130] sm:$0xff]  ;;  %v84_v14 = vperm.slane %v1982_v53, 4 }
 0x4de   :  { %v1092_v22 = vsel %vm556_vm1, %v2296_v15, 0.0  ;;  %1024 = vmatpush.msra.mxu0 %v1587_v13  ;;  %v1625_v13 = vld [vmem:[%s2536_s8 + $0x240] sm:$0xff] }
 0x4df   :  { %1662 = vpow2.f32 %v1090_v16  ;;  %1093 = vadd.xlane.f32.xlu1 %v1092_v22  ;;  %v1604_v16 = vld [vmem:[%s2536_s8 + $0x1a8] sm:$0xff]  ;;  %v207_v0 = vadd.f32 %v2273_v20, %v84_v14 }
 0x4e0   :  { %1664 = vpow2.f32 %v912_v18  ;;  %1201 = vmatpush.msrb.mxu3 %v1604_v16  ;;  %v1600_v20 = vld [vmem:[%s2536_s8 + $0x188] sm:$0xff]  ;;  %v1624_v16 = vld [vmem:[%s2536_s8 + $0x238] sm:$0xff] }
 0x4e5   :  { %v2300_v24 = vpop.eup %1662 }
 0x4e6   :  { %v2302_v25 = vpop.eup %1664  ;;  %v1095_v27 = vsel %vm556_vm1, %v2300_v24, 0.0 }
 0x4e7   :  { %1096 = vadd.xlane.f32.xlu0 %v1095_v27  ;;  %v916_v23 = vsel %vm556_vm1, %v2302_v25, 0.0  ;;  %v1586_v27 = vld [vmem:[%s2536_s8 + $0x128] sm:$0xff] }
 0x4e8   :  { %917 = vadd.xlane.f32.xlu2 %v916_v23  ;;  %1025 = vmatpush.msra.mxu0 %v1586_v27  ;;  %v1623_v27 = vld [vmem:[%s2536_s8 + $0x230] sm:$0xff] }
 0x552   :  { %v1094_v28 = vpop.xlane.xlu1 %1093 }
 0x553   :  { %1666 = vrcp.f32 %v1094_v28  ;;  %v1109_v44 = vand.u32 2147483648, %v1094_v28  ;;  %v1107_v47 = vand.u32 2147483647, %v1094_v28  ;;  %vm1103_vm9 = vweird.f32 %v1094_v28 }
 0x555   :  { %v1110_v55 = vor.u32 1.1754944e-38, %v1109_v44  ;;  %vm1108_vm11 = vcmp.eq.f32.partialorder %v1107_v47, 8.507059e+37 }
 0x559   :  { %v1667_v33 = vpop.eup %1666 }
 0x55a   :  { %v1099_v35 = vmul.f32 %v1667_v33, %v1094_v28  ;;  %v2326_v38 = vpop.xlane.xlu0 %1096  ;;  %vm1104_vm8 = vweird.f32 %v1667_v33  ;;  %v1603_v28 = vld [vmem:[%s2536_s8 + $0x1a0] sm:$0xff] }
 0x55b   :  { %v2331_v40 = vpop.xlane.xlu2 %917  ;;  %1668 = vrcp.f32 %v2326_v38  ;;  %vm1105_vm10 = vmor %vm1103_vm9, %vm1104_vm8  ;;  %v1124_v6 = vand.u32 2147483648, %v2326_v38  ;;  %v1122_v12 = vand.u32 2147483647, %v2326_v38  ;;  %vm1118_vm14 = vweird.f32 %v2326_v38  ;;  %1202 = vmatpush.msrb.mxu3 %v1603_v28 }
 0x55c   :  { %v1100_v43 = vsub.f32 1.0, %v1099_v35  ;;  %1670 = vrcp.f32 %v2331_v40  ;;  %v933_v58 = vand.u32 2147483648, %v2331_v40  ;;  %v931_v2 = vand.u32 2147483647, %v2331_v40  ;;  %v1602_v35 = vld [vmem:[%s2536_s8 + $0x198] sm:$0xff] }
 0x55d   :  { %vm927_vm15 = vweird.f32 %v2331_v40  ;;  %v1125_v22 = vor.u32 1.1754944e-38, %v1124_v6  ;;  %vm1123_vm4 = vcmp.eq.f32.partialorder %v1122_v12, 8.507059e+37  ;;  %1203 = vmatpush.msrb.mxu3 %v1602_v35 }
 0x55e   :  { %v1101_v46 = vmul.f32 %v1667_v33, %v1100_v43  ;;  %v934_v53 = vor.u32 1.1754944e-38, %v933_v58  ;;  %vm932_vm5 = vcmp.eq.f32.partialorder %v931_v2, 8.507059e+37  ;;  %v2432_v43 = vpop.f32.mrf.mxu2 }
 0x560   :  { %v1102_v51 = vadd.f32 %v1667_v33, %v1101_v46 }
 0x561   :  { %v1669_v54 = vpop.eup %1668 }
 0x562   :  { %v1671_v61 = vpop.eup %1670  ;;  %v1106_v62 = vsel %vm1105_vm10, %v1667_v33, %v1102_v51  ;;  %v1114_v1 = vmul.f32 %v1669_v54, %v2326_v38  ;;  %vm1119_vm12 = vweird.f32 %v1669_v54  ;;  %v514_v33 = vadd.f32 %v2265_v57, %v395_v63  ;;  %v1585_v38 = vld [vmem:[%s2536_s8 + $0x120] sm:$0xff]  ;;  %v1601_v57 = vld [vmem:[%s2536_s8 + $0x190] sm:$0xff] }
 0x563   :  { %v1111_v5 = vsel %vm1108_vm11, %v1110_v55, %v1106_v62  ;;  %v923_v17 = vmul.f32 %v1671_v61, %v2331_v40  ;;  %vm928_vm13 = vweird.f32 %v1671_v61  ;;  %vm1120_vm2 = vmor %vm1118_vm14, %vm1119_vm12  ;;  %1026 = vmatpush.msra.mxu0 %v1585_v38  ;;  %1204 = vmatpush.msrb.mxu3 %v1601_v57  ;;  %v1583_v40 = vld [vmem:[%s2536_s8 + $0x110] sm:$0xff]  ;;  %v1618_v38 = vld [vmem:[%s2536_s8 + $0x208] sm:$0xff] }
 0x564   :  { %v1115_v59 = vsub.f32 1.0, %v1114_v1  ;;  %v1112_v36 = vmul.f32 %v2296_v15, %v1111_v5  ;;  %vm929_vm3 = vmor %vm927_vm15, %vm928_vm13 }
 0x565   :  { %v924_v42 = vsub.f32 1.0, %v923_v17  ;;  %1205 = vmatpush.msrb.mxu3 %v1600_v20  ;;  %1027 = vmatpush.msra.mxu0 %v1584_v39  ;;  %v1632_v17 = vld [vmem:[%s2536_s8 + $0x278] sm:$0xff]  ;;  %v1617_v39 = vld [vmem:[%s2536_s8 + $0x200] sm:$0xff] }
 0x566   :  { %v1116_v11 = vmul.f32 %v1669_v54, %v1115_v59  ;;  %1597 = vmatmul.msk.f32.vlgmr.msrb.gmra.mxu1 %vm556_vm1, %v1112_v36  ;;  %v2434_v44 = vpop.f32.mrf.mxu2  ;;  %v1630_v59 = vld [vmem:[%s2536_s8 + $0x268] sm:$0xff]  ;;  %v1629_v36 = vld [vmem:[%s2536_s8 + $0x260] sm:$0xff] }
 0x567   :  { %v925_v3 = vmul.f32 %v1671_v61, %v924_v42  ;;  %1322 = vmatpush.msrb.mxu1 %v511_v29  ;;  %1028 = vmatpush.msra.mxu0 %v1583_v40  ;;  %v1628_v42 = vld [vmem:[%s2536_s8 + $0x258] sm:$0xff] }
 0x568   :  { %v1117_v15 = vadd.f32 %v1669_v54, %v1116_v11 }
 0x569   :  { %v926_v18 = vadd.f32 %v1671_v61, %v925_v3 }
 0x56a   :  { %v1121_v23 = vsel %vm1120_vm2, %v1669_v54, %v1117_v15 }
 0x56b   :  { %v930_v30 = vsel %vm929_vm3, %v1671_v61, %v926_v18  ;;  %v1126_v31 = vsel %vm1123_vm4, %v1125_v22, %v1121_v23 }
 0x56c   :  { %v935_v32 = vsel %vm932_vm5, %v934_v53, %v930_v30  ;;  %v1127_v50 = vmul.f32 %v2300_v24, %v1126_v31  ;;  %v210_v24 = vadd.f32 %v2275_v21, %v84_v14  ;;  %v1582_v21 = vld [vmem:[%s2536_s8 + $0x108] sm:$0xff]  ;;  %v1621_v30 = vld [vmem:[%s2536_s8 + $0x220] sm:$0xff] }
 0x56d   :  { %v936_v34 = vmul.f32 %v2302_v25, %v935_v32  ;;  %v1599_v25 = vld [vmem:[%s2536_s8 + $0x180] sm:$0xff]  ;;  %1029 = vmatpush.msra.mxu0 %v1582_v21  ;;  %v1622_v53 = vld [vmem:[%s2536_s8 + $0x228] sm:$0xff] }
 0x56e   :  { %1598 = vmatmul.msk.f32.vlgmr.msrb.gmra.mxu2 %vm556_vm1, %v1127_v50  ;;  %1232 = vmatmul.f32.vlgmr.msra.gmra.mxu1 %v207_v0  ;;  %v1620_v0 = vld [vmem:[%s2536_s8 + $0x218] sm:$0xff] }
 0x56f   :  { %1579 = vmatmul.msk.f32.vlgmr.msrb.gmra.mxu0 %vm556_vm1, %v936_v34  ;;  %1345 = vmatpush.msrb.mxu2 %v514_v33  ;;  %v1619_v34 = vld [vmem:[%s2536_s8 + $0x210] sm:$0xff] }
 0x570   :  { %1206 = vmatpush.msrb.mxu3 %v1599_v25  ;;  %1030 = vmatpush.msra.mxu0 %v1581_v41  ;;  %v858_v41 = vpop.f32.mrf.mxu3 }
 0x572   :  { %1367 = vmatpush.msrb.mxu0 %v1632_v17 }
 0x574   :  { %1368 = vmatpush.msrb.mxu0 %v1631_v7 }
 0x576   :  { %1252 = vmatmul.f32.vlgmr.msra.gmra.mxu2 %v210_v24  ;;  %1369 = vmatpush.msrb.mxu0 %v1630_v59 }
 0x578   :  { %1370 = vmatpush.msrb.mxu0 %v1629_v36  ;;  %v1712_v36 = vmov 40.0  }
 0x57a   :  { %1371 = vmatpush.msrb.mxu0 %v1628_v42 }
 0x57c   :  { %1372 = vmatpush.msrb.mxu0 %v1627_v37 }
 0x57e   :  { %1373 = vmatpush.msrb.mxu0 %v1626_v56 }
 0x580   :  { %1374 = vmatpush.msrb.mxu0 %v1625_v13 }
 0x582   :  { %1375 = vmatpush.msrb.mxu0 %v1624_v16 }
 0x584   :  { %1376 = vmatpush.msrb.mxu0 %v1623_v27 }
 0x586   :  { %1377 = vmatpush.msrb.mxu0 %v1622_v53 }
 0x588   :  { %1378 = vmatpush.msrb.mxu0 %v1621_v30 }
 0x58a   :  { %1379 = vmatpush.msrb.mxu0 %v1620_v0 }
 0x58c   :  { %1380 = vmatpush.msrb.mxu0 %v1619_v34 }
 0x58e   :  { %1381 = vmatpush.msrb.mxu0 %v1618_v38 }
 0x590   :  { %1382 = vmatpush.msrb.mxu0 %v1617_v39 }
 0x5e3   :  { %v1148_v26 = vpop.f32.mrf.mxu1 }
 0x5e4   :  { %1207 = vmatmul.f32.vlgmr.msrb.gmra.mxu3 %v1148_v26 }
 0x5eb   :  { %v1233_v45 = vpop.f32.mrf.mxu1 }
 0x5ec   :  { %v972_v46 = vpop.f32.mrf.mxu0  ;;  %v1256_v47 = vsel %vm556_vm1, %v1233_v45, -inf }
 0x5ed   :  { %1031 = vmatmul.f32.vlgmr.msra.gmra.mxu0 %v972_v46  ;;  %1257 = vmax.xlane.f32.xlu0 %v1256_v47  ;;  %v859_v47 = vadd.f32 %v858_v41, %v2432_v43 }
 0x5f1   :  { %v1171_v48 = vpop.f32.mrf.mxu2 }
 0x5f2   :  { %1210 = vmatmul.f32.gmra.mxu3 %v1171_v48 }
 0x5f5   :  { %1034 = vmatmul.f32.gmra.mxu0 %v2291_v8 }
 0x5f9   :  { %v1253_v49 = vpop.f32.mrf.mxu2 }
 0x5fa   :  { %v1259_v51 = vsel %vm556_vm1, %v1253_v49, -inf }
 0x5fb   :  { %1260 = vmax.xlane.f32.xlu1 %v1259_v51 }
 0x660   :  { %v1258_v52 = vpop.xlane.xlu0 %1257 }
 0x661   :  { %v1262_v54 = vsub.f32 %v1233_v45, %v1258_v52  ;;  %v861_v45 = vpop.f32.mrf.mxu3 }
 0x663   :  { %v1264_v63 = vmul.f32 1.442695, %v1262_v54 }
 0x665   :  { %1672 = vpow2.f32 %v1264_v63  ;;  %v1636_v63 = vld [vmem:[%s2537_s9] ss:$0 sm:$0xff] }
 0x66a   :  { %v1032_v26 = vpop.f32.mrf.mxu0 }
 0x66b   :  { %v1673_v55 = vpop.eup %1672  ;;  %v1038_v48 = vadd.f32 %v1032_v26, %v859_v47 }
 0x66c   :  { %v1268_v60 = vsel %vm556_vm1, %v1673_v55, 0.0 }
 0x66d   :  { %1269 = vadd.xlane.f32.xlu0 %v1268_v60 }
 0x66e   :  { %v1261_v61 = vpop.xlane.xlu1 %1260 }
 0x66f   :  { %v1263_v62 = vsub.f32 %v1253_v49, %v1261_v61  ;;  %v1208_v49 = vpop.f32.mrf.mxu3 }
 0x670   :  { %v1214_v51 = vadd.f32 %v1208_v49, %v1038_v48 }
 0x671   :  { %v1266_v1 = vmul.f32 1.442695, %v1263_v62  ;;  %v862_v62 = vadd.f32 %v861_v45, %v2434_v44 }
 0x672   :  { %v1035_v46 = vpop.f32.mrf.mxu0 }
 0x673   :  { %1674 = vpow2.f32 %v1266_v1 }
 0x677   :  { %v1211_v1 = vpop.f32.mrf.mxu3 }
 0x679   :  { %v2440_v4 = vpop.eup %1674 }
 0x67a   :  { %v1271_v8 = vsel %vm556_vm1, %v2440_v4, 0.0 }
 0x67b   :  { %1272 = vadd.xlane.f32.xlu1 %v1271_v8 }
 0x6e0   :  { %v1270_v5 = vpop.xlane.xlu0 %1269 }
 0x6e1   :  { %1676 = vrcp.f32 %v1270_v5  ;;  %v1285_v58 = vand.u32 2147483648, %v1270_v5  ;;  %v1283_v12 = vand.u32 2147483647, %v1270_v5  ;;  %vm1279_vm7 = vweird.f32 %v1270_v5 }
 0x6e3   :  { %v1286_v14 = vor.u32 1.1754944e-38, %v1285_v58  ;;  %vm1284_vm9 = vcmp.eq.f32.partialorder %v1283_v12, 8.507059e+37 }
 0x6e7   :  { %v1677_v9 = vpop.eup %1676 }
 0x6e8   :  { %v1275_v29 = vmul.f32 %v1677_v9, %v1270_v5  ;;  %vm1280_vm6 = vweird.f32 %v1677_v9 }
 0x6e9   :  { %vm1281_vm8 = vmor %vm1279_vm7, %vm1280_vm6  ;;  %vm1478_vm6 = vcmask 1041409   ;;  %vm1481_vm7 = vcmask 58368  }
 0x6ea   :  { %v1276_v6 = vsub.f32 1.0, %v1275_v29 }
 0x6ec   :  { %v1277_v11 = vmul.f32 %v1677_v9, %v1276_v6 }
 0x6ee   :  { %v1278_v3 = vadd.f32 %v1677_v9, %v1277_v11  ;;  %v1273_v2 = vpop.xlane.xlu1 %1272 }
 0x6ef   :  { %1678 = vrcp.f32 %v1273_v2  ;;  %v1300_v32 = vand.u32 2147483648, %v1273_v2  ;;  %v1298_v33 = vand.u32 2147483647, %v1273_v2  ;;  %vm1294_vm11 = vweird.f32 %v1273_v2 }
 0x6f0   :  { %v1282_v15 = vsel %vm1281_vm8, %v1677_v9, %v1278_v3  ;;  %1680 = vrcp.f32 %v1712_v36  ;;  %vm1511_vm8 = vcmask 9216  }
 0x6f1   :  { %v1287_v18 = vsel %vm1284_vm9, %v1286_v14, %v1282_v15  ;;  %v1301_v57 = vor.u32 1.1754944e-38, %v1300_v32  ;;  %vm1299_vm13 = vcmp.eq.f32.partialorder %v1298_v33, 8.507059e+37  ;;  %v1637_v32 = vld [vmem:[%s2538_s10] ss:$0 sm:$0xff] }
 0x6f2   :  { %v1288_v22 = vmul.f32 %v1673_v55, %v1287_v18 }
 0x6f4   :  { %1615 = vmatmul.msk.f32.vlgmr.msrb.gmra.mxu1 %vm556_vm1, %v1288_v22 }
 0x6f5   :  { %v1679_v23 = vpop.eup %1678 }
 0x6f6   :  { %v1290_v28 = vmul.f32 %v1679_v23, %v1273_v2  ;;  %vm1295_vm10 = vweird.f32 %v1679_v23 }
 0x6f7   :  { %vm1296_vm12 = vmor %vm1294_vm11, %vm1295_vm10 }
 0x6f8   :  { %v1291_v31 = vsub.f32 1.0, %v1290_v28 }
 0x6fa   :  { %v1292_v50 = vmul.f32 %v1679_v23, %v1291_v31 }
 0x6fc   :  { %v1293_v35 = vadd.f32 %v1679_v23, %v1292_v50 }
 0x6fe   :  { %v1297_v20 = vsel %vm1296_vm12, %v1679_v23, %v1293_v35  ;;  %v1638_v35 = vld [vmem:[%s2539_s11] ss:$0 sm:$0xff] }
 0x6ff   :  { %v1302_v24 = vsel %vm1299_vm13, %v1301_v57, %v1297_v20  ;;  %v1463_v57 = vld [vmem:[%s2540_s12] sm:$0xff]  ;;  %v1633_v20 = vld [vmem:[%s2540_s12 + $0x8] sm:$0xff]  ;;  %s1713_s12 = smov [#allocation2]  }
 0x700   :  { %v1303_v25 = vmul.f32 %v2440_v4, %v1302_v24  ;;  %v1039_v4 = vadd.f32 %v1035_v46, %v862_v62  ;;  %s1518_s6 = sshll.u32 %s1713_s12, 4  ;;  %s1519_s6 = int_to_ptr.vmem [resolvable:$true] %s1518_s6 }
 0x702   :  { %1616 = vmatmul.msk.f32.vlgmr.msrb.gmra.mxu2 %vm556_vm1, %v1303_v25  ;;  %v1215_v43 = vadd.f32 %v1211_v1, %v1039_v4  ;;  %v1474_v1 = vlaneseq }
 0x704   :  { %v1475_v4 = vand.u32 127, %v1474_v1 }
 0x771   :  { %v1324_v40 = vpop.f32.mrf.mxu1 }
 0x772   :  { %1383 = vmatmul.f32.vlgmr.msrb.gmra.mxu0 %v1324_v40 }
 0x785   :  { %v1347_v21 = vpop.f32.mrf.mxu2 }
 0x786   :  { %1386 = vmatmul.f32.gmra.mxu0 %v1347_v21 }
 0x7ef   :  { %v1384_v52 = vpop.f32.mrf.mxu0 }
 0x7f0   :  { %v1390_v54 = vadd.f32 %v1384_v52, %v1214_v51 }
 0x7f2   :  { %v1392_v55 = vadd.f32 %v1390_v54, %v1819_v10  ;;  %v1681_v10 = vpop.eup %1680 }
 0x7f3   :  { %v1407_v9 = vmul.f32 40.0, %v1681_v10  ;;  %vm1411_vm1 = vweird.f32 %v1681_v10 }
 0x7f4   :  { %v1398_v60 = vadd.f32 %v1636_v63, %v1392_v55 }
 0x7f5   :  { %v1408_v29 = vsub.f32 1.0, %v1407_v9 }
 0x7f6   :  { %v1400_v61 = vsel %vm90_vm0, %v1398_v60, 0.0 }
 0x7f7   :  { %1401 = vadd.xlane.f32.xlu2 %v1400_v61  ;;  %v1409_v42 = vmul.f32 %v1681_v10, %v1408_v29 }
 0x7f9   :  { %v1410_v6 = vadd.f32 %v1681_v10, %v1409_v42 }
 0x7fb   :  { %v1412_v44 = vsel %vm1411_vm1, %v1681_v10, %v1410_v6  ;;  %v1639_v6 = vld [vmem:[%s2541_s13] ss:$0 sm:$0xff] }
 0x803   :  { %v1387_v8 = vpop.f32.mrf.mxu0 }
 0x804   :  { %v1391_v5 = vadd.f32 %v1387_v8, %v1215_v43 }
 0x806   :  { %v1393_v17 = vadd.f32 %v1391_v5, %v1849_v19 }
 0x808   :  { %v1399_v7 = vadd.f32 %v1636_v63, %v1393_v17 }
 0x80a   :  { %v1403_v59 = vsel %vm90_vm0, %v1399_v7, 0.0 }
 0x80b   :  { %1404 = vadd.xlane.f32.xlu0 %v1403_v59 }
 0x86a   :  { %v1402_v37 = vpop.xlane.xlu2 %1401 }
 0x86b   :  { %v1413_v58 = vmul.f32 %v1412_v44, %v1402_v37 }
 0x86d   :  { %v1415_v11 = vsub.f32 %v1398_v60, %v1413_v58 }
 0x86f   :  { %v1417_v12 = vmul.f32 %v1415_v11, %v1415_v11 }
 0x871   :  { %v1419_v56 = vsel %vm90_vm0, %v1417_v12, 0.0 }
 0x872   :  { %1420 = vadd.xlane.f32.xlu1 %v1419_v56 }
 0x87e   :  { %v1405_v19 = vpop.xlane.xlu0 %1404 }
 0x87f   :  { %v1414_v3 = vmul.f32 %v1412_v44, %v1405_v19 }
 0x881   :  { %v1416_v2 = vsub.f32 %v1399_v7, %v1414_v3 }
 0x883   :  { %v1418_v13 = vmul.f32 %v1416_v2, %v1416_v2 }
 0x885   :  { %v1422_v14 = vsel %vm90_vm0, %v1418_v13, 0.0 }
 0x886   :  { %1423 = vadd.xlane.f32.xlu2 %v1422_v14 }
 0x8e5   :  { %v1421_v15 = vpop.xlane.xlu1 %1420 }
 0x8e6   :  { %v1425_v16 = vmul.f32 %v1421_v15, %v1412_v44 }
 0x8e8   :  { %v1427_v18 = vadd.f32 1e-05, %v1425_v16 }
 0x8ea   :  { %1682 = vrsqrt.f32 %v1427_v18  ;;  %vm1435_vm15 = vweird.f32 %v1427_v18 }
 0x8f0   :  { %v1683_v22 = vpop.eup %1682 }
 0x8f1   :  { %v1430_v27 = vmul.f32 %v1683_v22, %v1427_v18  ;;  %vm1436_vm14 = vweird.f32 %v1683_v22 }
 0x8f2   :  { %vm1437_vm2 = vmor %vm1435_vm15, %vm1436_vm14 }
 0x8f3   :  { %v1431_v53 = vmul.f32 %v1683_v22, %v1430_v27 }
 0x8f5   :  { %v1432_v23 = vmul.f32 0.5, %v1431_v53 }
 0x8f7   :  { %v1433_v28 = vsub.f32 1.5, %v1432_v23 }
 0x8f9   :  { %v1434_v30 = vmul.f32 %v1683_v22, %v1433_v28  ;;  %v1424_v31 = vpop.xlane.xlu2 %1423 }
 0x8fa   :  { %v1426_v0 = vmul.f32 %v1424_v31, %v1412_v44 }
 0x8fb   :  { %v1438_v50 = vsel %vm1437_vm2, %v1683_v22, %v1434_v30 }
 0x8fc   :  { %v1428_v33 = vadd.f32 1e-05, %v1426_v0  ;;  %v1449_v34 = vmul.f32 %v1438_v50, %v1415_v11 }
 0x8fe   :  { %1684 = vrsqrt.f32 %v1428_v33  ;;  %v1455_v38 = vmul.f32 %v1637_v32, %v1449_v34  ;;  %vm1445_vm4 = vweird.f32 %v1428_v33 }
 0x900   :  { %v1461_v24 = vadd.f32 %v1638_v35, %v1455_v38 }
 0x902   :  { %v1464_v25 = vmul.f32 %v1463_v57, %v1461_v24  ;;  %v1487_v39 = vmul.f32 %v1633_v20, %v1461_v24 }
 0x904   :  { %v1685_v40 = vpop.eup %1684  ;;  %v1466_v21 = vsel %vm90_vm0, %v1464_v25, 0.0  ;;  %v1489_v41 = vsel %vm90_vm0, %v1487_v39, 0.0 }
 0x905   :  { %v1440_v26 = vmul.f32 %v1685_v40, %v1428_v33  ;;  %1467 = vadd.xlane.f32.xlu0 %v1466_v21  ;;  %1490 = vadd.xlane.f32.xlu2 %v1489_v41  ;;  %vm1446_vm3 = vweird.f32 %v1685_v40 }
 0x906   :  { %vm1447_vm5 = vmor %vm1445_vm4, %vm1446_vm3 }
 0x907   :  { %v1441_v45 = vmul.f32 %v1685_v40, %v1440_v26 }
 0x909   :  { %v1442_v46 = vmul.f32 0.5, %v1441_v45 }
 0x90b   :  { %v1443_v47 = vsub.f32 1.5, %v1442_v46 }
 0x90d   :  { %v1444_v48 = vmul.f32 %v1685_v40, %v1443_v47 }
 0x90f   :  { %v1448_v49 = vsel %vm1447_vm5, %v1685_v40, %v1444_v48 }
 0x910   :  { %v1450_v51 = vmul.f32 %v1448_v49, %v1416_v2 }
 0x912   :  { %v1456_v52 = vmul.f32 %v1637_v32, %v1450_v51 }
 0x914   :  { %v1462_v54 = vadd.f32 %v1638_v35, %v1456_v52 }
 0x916   :  { %v1488_v63 = vmul.f32 %v1633_v20, %v1462_v54  ;;  %v1465_v55 = vmul.f32 %v1463_v57, %v1462_v54 }
 0x918   :  { %v1492_v60 = vsel %vm90_vm0, %v1488_v63, 0.0  ;;  %v1469_v61 = vsel %vm90_vm0, %v1465_v55, 0.0  ;;  %vm1504_vm0 = vcmask 7168  }
 0x919   :  { %1493 = vadd.xlane.f32.xlu0 %v1492_v60  ;;  %1470 = vadd.xlane.f32.xlu1 %v1469_v61 }
 0x978   :  { %v1468_v62 = vpop.xlane.xlu0 %1467  ;;  %v1491_v43 = vpop.xlane.xlu2 %1490 }
 0x979   :  { %v1497_v17 = vperm.slane %v1491_v43, %v1475_v4  ;;  %v1476_v7 = vperm.slane %v1468_v62, %v1475_v4 }
 0x98c   :  { %v1471_v8 = vpop.xlane.xlu1 %1470  ;;  %v1494_v5 = vpop.xlane.xlu0 %1493 }
 0x98d   :  { %v1477_v59 = vperm.slane %v1471_v8, %v1475_v4  ;;  %v1498_v36 = vperm.slane %v1494_v5, %v1475_v4 }
 0x98f   :  { %v1479_v10 = vsel %vm1478_vm6, %v1477_v59, %v1476_v7  ;;  %v1499_v9 = vsel %vm1478_vm6, %v1498_v36, %v1497_v17 }
 0x990   :  { %v1482_v29 = vsel %vm1481_vm7, %v1479_v10, 0.0  ;;  %v1501_v42 = vsel %vm1481_vm7, %v1499_v9, 0.0 }
 0x991   :  { %1483 = vadd.xlane.f32.xlu1 %v1482_v29  ;;  %1502 = vadd.xlane.f32.xlu2 %v1501_v42 }
 0xa04   :  { %v1484_v44 = vpop.xlane.xlu1 %1483  ;;  %v1503_v37 = vpop.xlane.xlu2 %1502 }
 0xa05   :  { %v1505_v58 = vsel %vm1504_vm0, %v1484_v44, %v1503_v37 }
 0xa06   :  { %v1510_v11 = vadd.f32 %v1639_v6, %v1505_v58 }
 0xa08   :  { %1512 = vst.msk [vmem:[#allocation2] sm:$0x3] %vm1511_vm8, %v1510_v11 }
 0xa09   :  { %1523 = dma.vmem_to_hbm [thread:$0]  %s1519_s6, 32, %s1521_s24, [#allocation3]  }
 0xa0a   :  { %1710 = dma.done.wait [#allocation3], 32  }
 0xa0b   :  { %1711 = vsyncadd [#allocation3], 4294967264 }
 0xa0c   :  { %1528 = vsyncpa [#allocation3], 1 }

</bundles_post_ra>
